<compile_context>
chip_gen: v5e
topology: v5e:2x2
jax: 0.10.0
libtpu: 0.0.40
codegen_flags: <defaults>
</compile_context>

<pallas_src>
import functools

import jax
import jax.numpy as jnp
from jax import lax
from jax.experimental import pallas as pl
from jax.experimental.pallas import tpu as pltpu

LN_EPS = 1e-5
LANE = 128
SUBLANE = 8
MAX_UNROLLED_HIDDEN = 8   # hidden layers <= this -> static unroll, else fori_loop


def _round_up(x, m):
    return (x + m - 1) // m * m


def _pad2(a, rows, cols):
    return jnp.pad(a, ((0, rows - a.shape[0]), (0, cols - a.shape[1])))


def _pad1(a, n):
    return jnp.pad(a, (0, n - a.shape[0]))


@functools.lru_cache(maxsize=1)
def _detect_tpu():
    """Best-effort (vmem_capacity_bytes, mxu_tile, is_v7x_like). Never raises."""
    vmem = 128 * 1024 * 1024
    kind = ""
    try:
        kind = jax.devices()[0].device_kind.lower()
    except Exception:
        pass
    try:
        vmem = int(pltpu.get_tpu_info().vmem_capacity_bytes)
    except Exception:
        pass
    is_v7 = ("v7" in kind) or (vmem <= 96 * 1024 * 1024)
    if is_v7:
        vmem = min(vmem, 64 * 1024 * 1024)      # per-TensorCore budget on v7x
    mxu = 256 if (is_v7 or ("v6" in kind)) else 128
    return vmem, mxu, is_v7


# ---------------------------------------------------------------------------
# Fused Pallas kernel: whole MLP for one batch tile
# ---------------------------------------------------------------------------
def _fused_mlp_kernel(x_ref, w0_ref, wh_ref, b_ref, g_ref, be_ref, wf_ref, bf_ref,
                      o_ref, *, depth, width, block0_residual, hidden_residual,
                      final_residual, dot_dtype, unroll_hidden):
    """depth x (Linear + LayerNorm + ReLU [+ residual]) -> final Linear [+ residual].

    All refs are lane-padded; padded activation lanes stay EXACTLY zero through
    every layer (zero-padded W columns / bias, gamma = beta = 0 on padded lanes),
    so LayerNorm sums over the padded width are correct with no masking.
    """
    inv_n = jnp.float32(1.0 / width)
    eps = jnp.float32(LN_EPS)

    def linear_ln_relu(h, w, b, g, be, add_residual):
        # Linear on the MXU: bf16 (or f32) inputs, f32 accumulation.
        y = jnp.dot(h.astype(dot_dtype), w, preferred_element_type=jnp.float32)
        y = y + b
        # LayerNorm over the true feature width (padded lanes of y are 0).
        mean = jnp.sum(y, axis=-1, keepdims=True) * inv_n
        var = jnp.sum(y * y, axis=-1, keepdims=True) * inv_n - mean * mean
        var = jnp.maximum(var, 0.0)
        y = (y - mean) * lax.rsqrt(var + eps)        # rsqrt -> EUP slot
        y = y * g + be                               # padded lanes -> 0 again
        y = jnp.maximum(y, 0.0)                      # ReLU
        return h + y if add_residual else y

    h = x_ref[...].astype(jnp.float32)

    # Layer 0: input_size -> width.
    h = linear_ln_relu(h, w0_ref[...], b_ref[0], g_ref[0], be_ref[0], block0_residual)

    # Hidden layers 1..depth-1 (width -> width).
    if depth > 1:
        if unroll_hidden:
            for l in range(1, depth):
                h = linear_ln_relu(h, wh_ref[l - 1], b_ref[l], g_ref[l], be_ref[l],
                                   hidden_residual)
        else:
            def body(l, hh):
                return linear_ln_relu(hh, wh_ref[l - 1], b_ref[l], g_ref[l],
                                      be_ref[l], hidden_residual)
            h = lax.fori_loop(1, depth, body, h)

    # Final Linear (width -> output_size), no norm / activation.
    y = jnp.dot(h.astype(dot_dtype), wf_ref[...], preferred_element_type=jnp.float32)
    y = y + bf_ref[...]
    if final_residual:            # only when width == output_size (shapes match)
        y = h + y
    o_ref[...] = y.astype(o_ref.dtype)


# ---------------------------------------------------------------------------
# Wrapper: pad/pack params, tile over batch, call the fused kernel
# ---------------------------------------------------------------------------
def mlp_forward_pallas(x, blocks, final, residual=True, batch_tile=None,
                       dot_dtype=jnp.bfloat16):
    B, input_size = x.shape
    depth = len(blocks)
    width = blocks[0]["dout"]
    output_size = final["dout"]

    vmem_cap, mxu_dim, is_v7 = _detect_tpu()

    def align(d):
        # Lane-dense (128) always; bump to the MXU tile (256 on v6e/v7x) once the
        # dim is big enough that odd multiples of 128 would idle half the array.
        a = mxu_dim if (mxu_dim > LANE and d > LANE) else LANE
        return _round_up(d, a)

    P_in, P_h, OUT_P = align(input_size), align(width), align(output_size)

    # ---- VMEM budgeting -----------------------------------------------------
    w_itemsize = jnp.dtype(dot_dtype).itemsize
    n_hid = max(depth - 1, 1)
    weight_bytes = (P_in * P_h + n_hid * P_h * P_h + P_h * OUT_P) * w_itemsize
    const_bytes = (3 * depth * P_h + OUT_P) * 4
    cap_usable = int(vmem_cap * 3 // 4)
    if weight_bytes > cap_usable:
        # TODO(synk): add a layer-streaming grid axis (weights indexed by layer,
        # activation carried in a VMEM scratch) for very wide/deep MLPs on v7x.
        pass

    # ---- batch tiling -------------------------------------------------------
    if batch_tile is None:
        # Weights are VMEM-resident; only (TB, P_in)/(TB, OUT_P) activation tiles
        # stream per step: large tiles on 128 MiB parts, modest on v7x (64 MiB/TC).
        batch_tile = 256 if is_v7 else 1024
    TB = _round_up(min(batch_tile, _round_up(B, SUBLANE)), SUBLANE)
    # v7x: force >= 2 grid steps (when batch allows) so ("parallel",) shards the
    # batch axis across both TensorCores.
    if is_v7 and B > SUBLANE and _round_up(B, TB) // TB < 2:
        TB = _round_up(pl.cdiv(B, 2), SUBLANE)

    def vmem_need(tb):
        act_io = 2 * tb * P_in * x.dtype.itemsize + 2 * tb * OUT_P * x.dtype.itemsize
        temps = 6 * tb * max(P_in, P_h, OUT_P) * 4
        return weight_bytes + const_bytes + act_io + temps

    while vmem_need(TB) > cap_usable and TB > SUBLANE:
        TB = max(SUBLANE, _round_up(TB // 2, SUBLANE))
    B_pad = _round_up(B, TB)

    # ---- pack / zero-pad parameters (padded lanes stay exactly zero) --------
    w0 = _pad2(blocks[0]["w"], P_in, P_h).astype(dot_dtype)
    if depth > 1:
        wh = jnp.stack([_pad2(p["w"], P_h, P_h) for p in blocks[1:]]).astype(dot_dtype)
    else:
        wh = jnp.zeros((1, P_h, P_h), dot_dtype)          # unused dummy
    b_stack = jnp.stack([_pad1(p["b"], P_h)[None, :] for p in blocks])        # f32
    g_stack = jnp.stack([_pad1(p["gamma"], P_h)[None, :] for p in blocks])    # f32
    be_stack = jnp.stack([_pad1(p["beta"], P_h)[None, :] for p in blocks])    # f32
    wf = _pad2(final["w"], P_h, OUT_P).astype(dot_dtype)
    bf = _pad1(final["b"], OUT_P)[None, :]                                    # f32

    x_p = jnp.pad(x, ((0, B_pad - B), (0, P_in - input_size)))

    # Static residual decisions (matching the PyTorch module).
    block0_res = bool(residual) and (input_size == width)
    final_res = bool(residual) and (width == output_size)
    unroll_hidden = (depth - 1) <= MAX_UNROLLED_HIDDEN

    kern = functools.partial(
        _fused_mlp_kernel, depth=depth, width=width,
        block0_residual=block0_res, hidden_residual=bool(residual),
        final_residual=final_res, dot_dtype=dot_dtype, unroll_hidden=unroll_hidden)

    flops = 2 * B_pad * (P_in * P_h + (depth - 1) * P_h * P_h + P_h * OUT_P)
    arrays = (x_p, w0, wh, b_stack, g_stack, be_stack, wf, bf)
    bytes_accessed = int(sum(int(a.size) * a.dtype.itemsize for a in arrays)
                         + B_pad * OUT_P * x.dtype.itemsize)
    cost = pl.CostEstimate(flops=int(flops), transcendentals=int(B_pad * depth),
                           bytes_accessed=bytes_accessed)

    vmem_limit = int(min(cap_usable, max(2 * vmem_need(TB) + (4 << 20), 32 << 20)))

    def build(single_buffer_consts):
        def const_spec(shape):
            # Blocks that never change across the grid: keep them VMEM-resident,
            # and (when supported) single-buffer them to halve their footprint.
            idx = (lambda i: (0, 0)) if len(shape) == 2 else (lambda i: (0, 0, 0))
            if single_buffer_consts:
                return pl.BlockSpec(shape, idx, pipeline_mode=pl.Buffered(1))
            return pl.BlockSpec(shape, idx)

        return pl.pallas_call(
            kern,
            out_shape=jax.ShapeDtypeStruct((B_pad, OUT_P), x.dtype),
            grid=(B_pad // TB,),
            in_specs=[
                pl.BlockSpec((TB, P_in), lambda i: (i, 0)),        # activation tile
                const_spec((P_in, P_h)),                           # layer-0 weight
                const_spec((wh.shape[0], P_h, P_h)),               # hidden weights
                const_spec((depth, 1, P_h)),                       # biases
                const_spec((depth, 1, P_h)),                       # gammas
                const_spec((depth, 1, P_h)),                       # betas
                const_spec((P_h, OUT_P)),                          # final weight
                const_spec((1, OUT_P)),                            # final bias
            ],
            out_specs=pl.BlockSpec((TB, OUT_P), lambda i: (i, 0)),
            compiler_params=pltpu.CompilerParams(
                dimension_semantics=("parallel",),
                vmem_limit_bytes=vmem_limit),
            cost_estimate=cost,
        )

    args = (x_p, w0, wh, b_stack, g_stack, be_stack, wf, bf)
    try:
        out_p = build(True)(*args)
    except Exception:
        # pl.Buffered(1) may not be honored on every jaxlib; default double
        # buffering is functionally identical, just uses a bit more VMEM.
        out_p = build(False)(*args)

    return out_p[:B, :output_size]


# ---------------------------------------------------------------------------
# Parameter init (deterministic; mirrors nn.Linear default uniform init)
# ---------------------------------------------------------------------------
def init_mlp_params(key, input_size, output_size, width, depth):
    blocks = []
    dims = [(input_size, width)] + [(width, width)] * (depth - 1)
    for din, dout in dims:
        key, kw, kb = jax.random.split(key, 3)
        bound = 1.0 / float(din) ** 0.5
        blocks.append(dict(
            w=jax.random.uniform(kw, (din, dout), jnp.float32, -bound, bound),
            b=jax.random.uniform(kb, (dout,), jnp.float32, -bound, bound),
            gamma=jnp.ones((dout,), jnp.float32),   # LayerNorm weight
            beta=jnp.zeros((dout,), jnp.float32),   # LayerNorm bias
            din=din, dout=dout,
        ))
    key, kw, kb = jax.random.split(key, 3)
    bound = 1.0 / float(width) ** 0.5
    final = dict(
        w=jax.random.uniform(kw, (width, output_size), jnp.float32, -bound, bound),
        b=jax.random.uniform(kb, (output_size,), jnp.float32, -bound, bound),
        din=width, dout=output_size,
    )
    return blocks, final


# ---------------------------------------------------------------------------
# Pure-JAX reference (unpadded); dot_dtype lets it mimic the bf16 MXU path
# ---------------------------------------------------------------------------
def mlp_reference(x, blocks, final, residual=True, dot_dtype=jnp.float32):
    def mm(a, w):
        return jnp.dot(a.astype(dot_dtype), w.astype(dot_dtype),
                       preferred_element_type=jnp.float32)

    h = x.astype(jnp.float32)
    for p in blocks:
        y = mm(h, p["w"]) + p["b"]
        mean = jnp.mean(y, axis=-1, keepdims=True)
        var = jnp.mean((y - mean) ** 2, axis=-1, keepdims=True)
        y = (y - mean) * lax.rsqrt(var + LN_EPS)
        y = y * p["gamma"] + p["beta"]
        y = jnp.maximum(y, 0.0)
        h = h + y if (residual and p["din"] == p["dout"]) else y
    y = mm(h, final["w"]) + final["b"]
    h = h + y if (residual and final["din"] == final["dout"]) else y
    return h


if __name__ == "__main__":
    key = jax.random.PRNGKey(0)

    # ---- Config A: module-default small shapes (static-unrolled hidden layers) ----
    # MLP(input_size=16, output_size=4, width=32, depth=3, relu, LayerNorm, residual)
    B, DIN, DOUT, W, DEPTH = 8, 16, 4, 32, 3
    key, kx = jax.random.split(key)
    x = jax.random.normal(kx, (B, DIN), jnp.float32)
    blocks, final = init_mlp_params(key, DIN, DOUT, W, DEPTH)

    ref_f32 = mlp_reference(x, blocks, final, residual=True, dot_dtype=jnp.float32)

    out_f32 = jax.block_until_ready(
        mlp_forward_pallas(x, blocks, final, residual=True, dot_dtype=jnp.float32))
    assert out_f32.shape == (B, DOUT)
    assert jnp.allclose(out_f32, ref_f32, atol=1e-3, rtol=1e-3), "f32 path mismatch"

    out_bf16 = jax.block_until_ready(
        mlp_forward_pallas(x, blocks, final, residual=True))          # bf16 MXU path
    ref_bf16 = mlp_reference(x, blocks, final, residual=True, dot_dtype=jnp.bfloat16)
    assert jnp.allclose(out_bf16, ref_bf16, atol=2e-2, rtol=2e-2), "bf16 path mismatch"
    assert jnp.allclose(out_bf16, ref_f32, atol=1e-1, rtol=1e-1), "bf16 vs f32 sanity"

    # ---- Config B: deep + residual everywhere, exercises the fori_loop path ----
    B2, DIN2, DOUT2, W2, DEPTH2 = 16, 32, 32, 32, 12
    key, kx2 = jax.random.split(key)
    x2 = jax.random.normal(kx2, (B2, DIN2), jnp.float32)
    blocks2, final2 = init_mlp_params(key, DIN2, DOUT2, W2, DEPTH2)

    ref2_f32 = mlp_reference(x2, blocks2, final2, residual=True, dot_dtype=jnp.float32)
    out2_f32 = jax.block_until_ready(
        mlp_forward_pallas(x2, blocks2, final2, residual=True, dot_dtype=jnp.float32))
    assert out2_f32.shape == (B2, DOUT2)
    assert jnp.allclose(out2_f32, ref2_f32, atol=5e-2, rtol=5e-2), "deep f32 mismatch"

    out2_bf16 = jax.block_until_ready(
        mlp_forward_pallas(x2, blocks2, final2, residual=True))
    ref2_bf16 = mlp_reference(x2, blocks2, final2, residual=True, dot_dtype=jnp.bfloat16)
    assert jnp.allclose(out2_bf16, ref2_bf16, atol=1e-1, rtol=1e-1), "deep bf16 sanity"

    print("KERNEL_OK")
</pallas_src>

<mosaic_0001>
module attributes {stable_mosaic.version = 11 : i64} {
  func.func @_fused_mlp_kernel(%arg0: i32, %arg1: memref<8x128xf32, #tpu.memory_space<vmem>>, %arg2: memref<128x128xf32, #tpu.memory_space<vmem>>, %arg3: memref<2x128x128xf32, #tpu.memory_space<vmem>>, %arg4: memref<3x1x128xf32, #tpu.memory_space<vmem>>, %arg5: memref<3x1x128xf32, #tpu.memory_space<vmem>>, %arg6: memref<3x1x128xf32, #tpu.memory_space<vmem>>, %arg7: memref<128x128xf32, #tpu.memory_space<vmem>>, %arg8: memref<1x128xf32, #tpu.memory_space<vmem>>, %arg9: memref<8x128xf32, #tpu.memory_space<vmem>>) attributes {dimension_semantics = [#tpu.dimension_semantics<parallel>], iteration_bounds = array<i64: 1>, scalar_prefetch = 0 : i64, scratch_operands = 0 : i64, tpu.core_type = #tpu.core_type<tc>, window_params = [{transform_indices = @transform_0, window_bounds = array<i64: 8, 128>}, {pipeline_mode = #tpu.pipeline_mode<synchronous>, transform_indices = @transform_1, window_bounds = array<i64: 128, 128>}, {pipeline_mode = #tpu.pipeline_mode<synchronous>, transform_indices = @transform_2, window_bounds = array<i64: 2, 128, 128>}, {pipeline_mode = #tpu.pipeline_mode<synchronous>, transform_indices = @transform_3, window_bounds = array<i64: 3, 1, 128>}, {pipeline_mode = #tpu.pipeline_mode<synchronous>, transform_indices = @transform_4, window_bounds = array<i64: 3, 1, 128>}, {pipeline_mode = #tpu.pipeline_mode<synchronous>, transform_indices = @transform_5, window_bounds = array<i64: 3, 1, 128>}, {pipeline_mode = #tpu.pipeline_mode<synchronous>, transform_indices = @transform_6, window_bounds = array<i64: 128, 128>}, {pipeline_mode = #tpu.pipeline_mode<synchronous>, transform_indices = @transform_7, window_bounds = array<i64: 1, 128>}, {transform_indices = @transform_8, window_bounds = array<i64: 8, 128>}]} {
    %c0 = arith.constant 0 : index
    %c0_0 = arith.constant 0 : index
    %0 = vector.load %arg1[%c0, %c0_0] : memref<8x128xf32, #tpu.memory_space<vmem>>, vector<8x128xf32>
    %c0_1 = arith.constant 0 : index
    %c0_2 = arith.constant 0 : index
    %1 = vector.load %arg2[%c0_1, %c0_2] : memref<128x128xf32, #tpu.memory_space<vmem>>, vector<128x128xf32>
    %c0_3 = arith.constant 0 : index
    %c0_4 = arith.constant 0 : index
    %c0_5 = arith.constant 0 : index
    %2 = vector.load %arg4[%c0_3, %c0_4, %c0_5] : memref<3x1x128xf32, #tpu.memory_space<vmem>>, vector<1x1x128xf32>
    %3 = vector.shape_cast %2 : vector<1x1x128xf32> to vector<1x128xf32>
    %c0_6 = arith.constant 0 : index
    %c0_7 = arith.constant 0 : index
    %c0_8 = arith.constant 0 : index
    %4 = vector.load %arg5[%c0_6, %c0_7, %c0_8] : memref<3x1x128xf32, #tpu.memory_space<vmem>>, vector<1x1x128xf32>
    %5 = vector.shape_cast %4 : vector<1x1x128xf32> to vector<1x128xf32>
    %c0_9 = arith.constant 0 : index
    %c0_10 = arith.constant 0 : index
    %c0_11 = arith.constant 0 : index
    %6 = vector.load %arg6[%c0_9, %c0_10, %c0_11] : memref<3x1x128xf32, #tpu.memory_space<vmem>>, vector<1x1x128xf32>
    %7 = vector.shape_cast %6 : vector<1x1x128xf32> to vector<1x128xf32>
    %cst = arith.constant dense<0.000000e+00> : vector<8x128xf32>
    %8 = tpu.matmul %0, %1, %cst {dimension_numbers = #tpu.dot_dimension_numbers<[1], [0], [0], [1], [0, 0, 1, 1], [], []>} : vector<8x128xf32>, vector<128x128xf32>, vector<8x128xf32> -> vector<8x128xf32>
    %9 = vector.broadcast %3 : vector<1x128xf32> to vector<8x128xf32>
    %10 = arith.addf %8, %9 : vector<8x128xf32>
    %cst_12 = arith.constant dense<0.000000e+00> : vector<8xf32>
    %11 = vector.multi_reduction <add>, %10, %cst_12 [1] : vector<8x128xf32> to vector<8xf32>
    %12 = vector.shape_cast %11 : vector<8xf32> to vector<8x1xf32>
    %cst_13 = arith.constant 3.125000e-02 : f32
    %13 = vector.broadcast %cst_13 : f32 to vector<8x1xf32>
    %14 = arith.mulf %12, %13 : vector<8x1xf32>
    %15 = arith.mulf %10, %10 : vector<8x128xf32>
    %cst_14 = arith.constant dense<0.000000e+00> : vector<8xf32>
    %16 = vector.multi_reduction <add>, %15, %cst_14 [1] : vector<8x128xf32> to vector<8xf32>
    %17 = vector.shape_cast %16 : vector<8xf32> to vector<8x1xf32>
    %cst_15 = arith.constant 3.125000e-02 : f32
    %18 = vector.broadcast %cst_15 : f32 to vector<8x1xf32>
    %19 = arith.mulf %17, %18 : vector<8x1xf32>
    %20 = arith.mulf %14, %14 : vector<8x1xf32>
    %21 = arith.subf %19, %20 : vector<8x1xf32>
    %cst_16 = arith.constant 0.000000e+00 : f32
    %22 = vector.broadcast %cst_16 : f32 to vector<8x1xf32>
    %23 = arith.maximumf %21, %22 : vector<8x1xf32>
    %24 = vector.broadcast %14 : vector<8x1xf32> to vector<8x128xf32>
    %25 = arith.subf %10, %24 : vector<8x128xf32>
    %cst_17 = arith.constant 9.99999974E-6 : f32
    %26 = vector.broadcast %cst_17 : f32 to vector<8x1xf32>
    %27 = arith.addf %23, %26 : vector<8x1xf32>
    %28 = math.rsqrt %27 : vector<8x1xf32>
    %29 = vector.broadcast %28 : vector<8x1xf32> to vector<8x128xf32>
    %30 = arith.mulf %25, %29 : vector<8x128xf32>
    %31 = vector.broadcast %5 : vector<1x128xf32> to vector<8x128xf32>
    %32 = arith.mulf %30, %31 : vector<8x128xf32>
    %33 = vector.broadcast %7 : vector<1x128xf32> to vector<8x128xf32>
    %34 = arith.addf %32, %33 : vector<8x128xf32>
    %cst_18 = arith.constant 0.000000e+00 : f32
    %35 = vector.broadcast %cst_18 : f32 to vector<8x128xf32>
    %36 = arith.maximumf %34, %35 : vector<8x128xf32>
    %c0_19 = arith.constant 0 : index
    %c0_20 = arith.constant 0 : index
    %c0_21 = arith.constant 0 : index
    %37 = vector.load %arg3[%c0_19, %c0_20, %c0_21] : memref<2x128x128xf32, #tpu.memory_space<vmem>>, vector<1x128x128xf32>
    %38 = vector.shape_cast %37 : vector<1x128x128xf32> to vector<128x128xf32>
    %c1 = arith.constant 1 : index
    %c0_22 = arith.constant 0 : index
    %c0_23 = arith.constant 0 : index
    %39 = vector.load %arg4[%c1, %c0_22, %c0_23] : memref<3x1x128xf32, #tpu.memory_space<vmem>>, vector<1x1x128xf32>
    %40 = vector.shape_cast %39 : vector<1x1x128xf32> to vector<1x128xf32>
    %c1_24 = arith.constant 1 : index
    %c0_25 = arith.constant 0 : index
    %c0_26 = arith.constant 0 : index
    %41 = vector.load %arg5[%c1_24, %c0_25, %c0_26] : memref<3x1x128xf32, #tpu.memory_space<vmem>>, vector<1x1x128xf32>
    %42 = vector.shape_cast %41 : vector<1x1x128xf32> to vector<1x128xf32>
    %c1_27 = arith.constant 1 : index
    %c0_28 = arith.constant 0 : index
    %c0_29 = arith.constant 0 : index
    %43 = vector.load %arg6[%c1_27, %c0_28, %c0_29] : memref<3x1x128xf32, #tpu.memory_space<vmem>>, vector<1x1x128xf32>
    %44 = vector.shape_cast %43 : vector<1x1x128xf32> to vector<1x128xf32>
    %cst_30 = arith.constant dense<0.000000e+00> : vector<8x128xf32>
    %45 = tpu.matmul %36, %38, %cst_30 {dimension_numbers = #tpu.dot_dimension_numbers<[1], [0], [0], [1], [0, 0, 1, 1], [], []>} : vector<8x128xf32>, vector<128x128xf32>, vector<8x128xf32> -> vector<8x128xf32>
    %46 = vector.broadcast %40 : vector<1x128xf32> to vector<8x128xf32>
    %47 = arith.addf %45, %46 : vector<8x128xf32>
    %cst_31 = arith.constant dense<0.000000e+00> : vector<8xf32>
    %48 = vector.multi_reduction <add>, %47, %cst_31 [1] : vector<8x128xf32> to vector<8xf32>
    %49 = vector.shape_cast %48 : vector<8xf32> to vector<8x1xf32>
    %cst_32 = arith.constant 3.125000e-02 : f32
    %50 = vector.broadcast %cst_32 : f32 to vector<8x1xf32>
    %51 = arith.mulf %49, %50 : vector<8x1xf32>
    %52 = arith.mulf %47, %47 : vector<8x128xf32>
    %cst_33 = arith.constant dense<0.000000e+00> : vector<8xf32>
    %53 = vector.multi_reduction <add>, %52, %cst_33 [1] : vector<8x128xf32> to vector<8xf32>
    %54 = vector.shape_cast %53 : vector<8xf32> to vector<8x1xf32>
    %cst_34 = arith.constant 3.125000e-02 : f32
    %55 = vector.broadcast %cst_34 : f32 to vector<8x1xf32>
    %56 = arith.mulf %54, %55 : vector<8x1xf32>
    %57 = arith.mulf %51, %51 : vector<8x1xf32>
    %58 = arith.subf %56, %57 : vector<8x1xf32>
    %cst_35 = arith.constant 0.000000e+00 : f32
    %59 = vector.broadcast %cst_35 : f32 to vector<8x1xf32>
    %60 = arith.maximumf %58, %59 : vector<8x1xf32>
    %61 = vector.broadcast %51 : vector<8x1xf32> to vector<8x128xf32>
    %62 = arith.subf %47, %61 : vector<8x128xf32>
    %cst_36 = arith.constant 9.99999974E-6 : f32
    %63 = vector.broadcast %cst_36 : f32 to vector<8x1xf32>
    %64 = arith.addf %60, %63 : vector<8x1xf32>
    %65 = math.rsqrt %64 : vector<8x1xf32>
    %66 = vector.broadcast %65 : vector<8x1xf32> to vector<8x128xf32>
    %67 = arith.mulf %62, %66 : vector<8x128xf32>
    %68 = vector.broadcast %42 : vector<1x128xf32> to vector<8x128xf32>
    %69 = arith.mulf %67, %68 : vector<8x128xf32>
    %70 = vector.broadcast %44 : vector<1x128xf32> to vector<8x128xf32>
    %71 = arith.addf %69, %70 : vector<8x128xf32>
    %cst_37 = arith.constant 0.000000e+00 : f32
    %72 = vector.broadcast %cst_37 : f32 to vector<8x128xf32>
    %73 = arith.maximumf %71, %72 : vector<8x128xf32>
    %74 = arith.addf %36, %73 : vector<8x128xf32>
    %c1_38 = arith.constant 1 : index
    %c0_39 = arith.constant 0 : index
    %c0_40 = arith.constant 0 : index
    %75 = vector.load %arg3[%c1_38, %c0_39, %c0_40] : memref<2x128x128xf32, #tpu.memory_space<vmem>>, vector<1x128x128xf32>
    %76 = vector.shape_cast %75 : vector<1x128x128xf32> to vector<128x128xf32>
    %c2 = arith.constant 2 : index
    %c0_41 = arith.constant 0 : index
    %c0_42 = arith.constant 0 : index
    %77 = vector.load %arg4[%c2, %c0_41, %c0_42] : memref<3x1x128xf32, #tpu.memory_space<vmem>>, vector<1x1x128xf32>
    %78 = vector.shape_cast %77 : vector<1x1x128xf32> to vector<1x128xf32>
    %c2_43 = arith.constant 2 : index
    %c0_44 = arith.constant 0 : index
    %c0_45 = arith.constant 0 : index
    %79 = vector.load %arg5[%c2_43, %c0_44, %c0_45] : memref<3x1x128xf32, #tpu.memory_space<vmem>>, vector<1x1x128xf32>
    %80 = vector.shape_cast %79 : vector<1x1x128xf32> to vector<1x128xf32>
    %c2_46 = arith.constant 2 : index
    %c0_47 = arith.constant 0 : index
    %c0_48 = arith.constant 0 : index
    %81 = vector.load %arg6[%c2_46, %c0_47, %c0_48] : memref<3x1x128xf32, #tpu.memory_space<vmem>>, vector<1x1x128xf32>
    %82 = vector.shape_cast %81 : vector<1x1x128xf32> to vector<1x128xf32>
    %cst_49 = arith.constant dense<0.000000e+00> : vector<8x128xf32>
    %83 = tpu.matmul %74, %76, %cst_49 {dimension_numbers = #tpu.dot_dimension_numbers<[1], [0], [0], [1], [0, 0, 1, 1], [], []>} : vector<8x128xf32>, vector<128x128xf32>, vector<8x128xf32> -> vector<8x128xf32>
    %84 = vector.broadcast %78 : vector<1x128xf32> to vector<8x128xf32>
    %85 = arith.addf %83, %84 : vector<8x128xf32>
    %cst_50 = arith.constant dense<0.000000e+00> : vector<8xf32>
    %86 = vector.multi_reduction <add>, %85, %cst_50 [1] : vector<8x128xf32> to vector<8xf32>
    %87 = vector.shape_cast %86 : vector<8xf32> to vector<8x1xf32>
    %cst_51 = arith.constant 3.125000e-02 : f32
    %88 = vector.broadcast %cst_51 : f32 to vector<8x1xf32>
    %89 = arith.mulf %87, %88 : vector<8x1xf32>
    %90 = arith.mulf %85, %85 : vector<8x128xf32>
    %cst_52 = arith.constant dense<0.000000e+00> : vector<8xf32>
    %91 = vector.multi_reduction <add>, %90, %cst_52 [1] : vector<8x128xf32> to vector<8xf32>
    %92 = vector.shape_cast %91 : vector<8xf32> to vector<8x1xf32>
    %cst_53 = arith.constant 3.125000e-02 : f32
    %93 = vector.broadcast %cst_53 : f32 to vector<8x1xf32>
    %94 = arith.mulf %92, %93 : vector<8x1xf32>
    %95 = arith.mulf %89, %89 : vector<8x1xf32>
    %96 = arith.subf %94, %95 : vector<8x1xf32>
    %cst_54 = arith.constant 0.000000e+00 : f32
    %97 = vector.broadcast %cst_54 : f32 to vector<8x1xf32>
    %98 = arith.maximumf %96, %97 : vector<8x1xf32>
    %99 = vector.broadcast %89 : vector<8x1xf32> to vector<8x128xf32>
    %100 = arith.subf %85, %99 : vector<8x128xf32>
    %cst_55 = arith.constant 9.99999974E-6 : f32
    %101 = vector.broadcast %cst_55 : f32 to vector<8x1xf32>
    %102 = arith.addf %98, %101 : vector<8x1xf32>
    %103 = math.rsqrt %102 : vector<8x1xf32>
    %104 = vector.broadcast %103 : vector<8x1xf32> to vector<8x128xf32>
    %105 = arith.mulf %100, %104 : vector<8x128xf32>
    %106 = vector.broadcast %80 : vector<1x128xf32> to vector<8x128xf32>
    %107 = arith.mulf %105, %106 : vector<8x128xf32>
    %108 = vector.broadcast %82 : vector<1x128xf32> to vector<8x128xf32>
    %109 = arith.addf %107, %108 : vector<8x128xf32>
    %cst_56 = arith.constant 0.000000e+00 : f32
    %110 = vector.broadcast %cst_56 : f32 to vector<8x128xf32>
    %111 = arith.maximumf %109, %110 : vector<8x128xf32>
    %112 = arith.addf %74, %111 : vector<8x128xf32>
    %c0_57 = arith.constant 0 : index
    %c0_58 = arith.constant 0 : index
    %113 = vector.load %arg7[%c0_57, %c0_58] : memref<128x128xf32, #tpu.memory_space<vmem>>, vector<128x128xf32>
    %cst_59 = arith.constant dense<0.000000e+00> : vector<8x128xf32>
    %114 = tpu.matmul %112, %113, %cst_59 {dimension_numbers = #tpu.dot_dimension_numbers<[1], [0], [0], [1], [0, 0, 1, 1], [], []>} : vector<8x128xf32>, vector<128x128xf32>, vector<8x128xf32> -> vector<8x128xf32>
    %c0_60 = arith.constant 0 : index
    %c0_61 = arith.constant 0 : index
    %115 = vector.load %arg8[%c0_60, %c0_61] : memref<1x128xf32, #tpu.memory_space<vmem>>, vector<1x128xf32>
    %116 = vector.broadcast %115 : vector<1x128xf32> to vector<8x128xf32>
    %117 = arith.addf %114, %116 : vector<8x128xf32>
    %c0_62 = arith.constant 0 : index
    %c0_63 = arith.constant 0 : index
    %118 = vector.load %arg9[%c0_62, %c0_63] : memref<8x128xf32, #tpu.memory_space<vmem>>, vector<8x128xf32>
    tpu.vector_store %arg9[%c0_62, %c0_63], %117 {strides = array<i32>} : memref<8x128xf32, #tpu.memory_space<vmem>>, vector<8x128xf32>,
    return
  }
  func.func @transform_0(%arg0: i32) -> (i32, i32) {
    %c0_i32 = arith.constant 0 : i32
    %c0_i32_0 = arith.constant 0 : i32
    return %arg0, %c0_i32 : i32, i32
  }
  func.func @transform_1(%arg0: i32) -> (i32, i32) {
    %c0_i32 = arith.constant 0 : i32
    %c0_i32_0 = arith.constant 0 : i32
    %c0_i32_1 = arith.constant 0 : i32
    return %c0_i32, %c0_i32_0 : i32, i32
  }
  func.func @transform_2(%arg0: i32) -> (i32, i32, i32) {
    %c0_i32 = arith.constant 0 : i32
    %c0_i32_0 = arith.constant 0 : i32
    %c0_i32_1 = arith.constant 0 : i32
    %c0_i32_2 = arith.constant 0 : i32
    return %c0_i32, %c0_i32_0, %c0_i32_1 : i32, i32, i32
  }
  func.func @transform_3(%arg0: i32) -> (i32, i32, i32) {
    %c0_i32 = arith.constant 0 : i32
    %c0_i32_0 = arith.constant 0 : i32
    %c0_i32_1 = arith.constant 0 : i32
    %c0_i32_2 = arith.constant 0 : i32
    return %c0_i32, %c0_i32_0, %c0_i32_1 : i32, i32, i32
  }
  func.func @transform_4(%arg0: i32) -> (i32, i32, i32) {
    %c0_i32 = arith.constant 0 : i32
    %c0_i32_0 = arith.constant 0 : i32
    %c0_i32_1 = arith.constant 0 : i32
    %c0_i32_2 = arith.constant 0 : i32
    return %c0_i32, %c0_i32_0, %c0_i32_1 : i32, i32, i32
  }
  func.func @transform_5(%arg0: i32) -> (i32, i32, i32) {
    %c0_i32 = arith.constant 0 : i32
    %c0_i32_0 = arith.constant 0 : i32
    %c0_i32_1 = arith.constant 0 : i32
    %c0_i32_2 = arith.constant 0 : i32
    return %c0_i32, %c0_i32_0, %c0_i32_1 : i32, i32, i32
  }
  func.func @transform_6(%arg0: i32) -> (i32, i32) {
    %c0_i32 = arith.constant 0 : i32
    %c0_i32_0 = arith.constant 0 : i32
    %c0_i32_1 = arith.constant 0 : i32
    return %c0_i32, %c0_i32_0 : i32, i32
  }
  func.func @transform_7(%arg0: i32) -> (i32, i32) {
    %c0_i32 = arith.constant 0 : i32
    %c0_i32_0 = arith.constant 0 : i32
    %c0_i32_1 = arith.constant 0 : i32
    return %c0_i32, %c0_i32_0 : i32, i32
  }
  func.func @transform_8(%arg0: i32) -> (i32, i32) {
    %c0_i32 = arith.constant 0 : i32
    %c0_i32_0 = arith.constant 0 : i32
    return %arg0, %c0_i32 : i32, i32
  }
}

module attributes {stable_mosaic.version = 11 : i64} {
  func.func @_fused_mlp_kernel(%arg0: i32, %arg1: memref<8x128xf32, #tpu.memory_space<vmem>>, %arg2: memref<128x128xf32, #tpu.memory_space<vmem>>, %arg3: memref<2x128x128xf32, #tpu.memory_space<vmem>>, %arg4: memref<3x1x128xf32, #tpu.memory_space<vmem>>, %arg5: memref<3x1x128xf32, #tpu.memory_space<vmem>>, %arg6: memref<3x1x128xf32, #tpu.memory_space<vmem>>, %arg7: memref<128x128xf32, #tpu.memory_space<vmem>>, %arg8: memref<1x128xf32, #tpu.memory_space<vmem>>, %arg9: memref<8x128xf32, #tpu.memory_space<vmem>>) attributes {dimension_semantics = [#tpu.dimension_semantics<parallel>], iteration_bounds = array<i64: 1>, scalar_prefetch = 0 : i64, scratch_operands = 0 : i64, tpu.core_type = #tpu.core_type<tc>, window_params = [{transform_indices = @transform_0, window_bounds = array<i64: 8, 128>}, {pipeline_mode = #tpu.pipeline_mode<synchronous>, transform_indices = @transform_1, window_bounds = array<i64: 128, 128>}, {pipeline_mode = #tpu.pipeline_mode<synchronous>, transform_indices = @transform_2, window_bounds = array<i64: 2, 128, 128>}, {pipeline_mode = #tpu.pipeline_mode<synchronous>, transform_indices = @transform_3, window_bounds = array<i64: 3, 1, 128>}, {pipeline_mode = #tpu.pipeline_mode<synchronous>, transform_indices = @transform_4, window_bounds = array<i64: 3, 1, 128>}, {pipeline_mode = #tpu.pipeline_mode<synchronous>, transform_indices = @transform_5, window_bounds = array<i64: 3, 1, 128>}, {pipeline_mode = #tpu.pipeline_mode<synchronous>, transform_indices = @transform_6, window_bounds = array<i64: 128, 128>}, {pipeline_mode = #tpu.pipeline_mode<synchronous>, transform_indices = @transform_7, window_bounds = array<i64: 1, 128>}, {transform_indices = @transform_8, window_bounds = array<i64: 8, 128>}]} {
    %c0 = arith.constant 0 : index
    %c0_0 = arith.constant 0 : index
    %0 = vector.load %arg1[%c0, %c0_0] : memref<8x128xf32, #tpu.memory_space<vmem>>, vector<8x128xf32>
    %c0_1 = arith.constant 0 : index
    %c0_2 = arith.constant 0 : index
    %1 = vector.load %arg2[%c0_1, %c0_2] : memref<128x128xf32, #tpu.memory_space<vmem>>, vector<128x128xf32>
    %c0_3 = arith.constant 0 : index
    %c0_4 = arith.constant 0 : index
    %c0_5 = arith.constant 0 : index
    %2 = vector.load %arg4[%c0_3, %c0_4, %c0_5] : memref<3x1x128xf32, #tpu.memory_space<vmem>>, vector<1x1x128xf32>
    %3 = vector.shape_cast %2 : vector<1x1x128xf32> to vector<1x128xf32>
    %c0_6 = arith.constant 0 : index
    %c0_7 = arith.constant 0 : index
    %c0_8 = arith.constant 0 : index
    %4 = vector.load %arg5[%c0_6, %c0_7, %c0_8] : memref<3x1x128xf32, #tpu.memory_space<vmem>>, vector<1x1x128xf32>
    %5 = vector.shape_cast %4 : vector<1x1x128xf32> to vector<1x128xf32>
    %c0_9 = arith.constant 0 : index
    %c0_10 = arith.constant 0 : index
    %c0_11 = arith.constant 0 : index
    %6 = vector.load %arg6[%c0_9, %c0_10, %c0_11] : memref<3x1x128xf32, #tpu.memory_space<vmem>>, vector<1x1x128xf32>
    %7 = vector.shape_cast %6 : vector<1x1x128xf32> to vector<1x128xf32>
    %cst = arith.constant dense<0.000000e+00> : vector<8x128xf32>
    %8 = tpu.matmul %0, %1, %cst {dimension_numbers = #tpu.dot_dimension_numbers<[1], [0], [0], [1], [0, 0, 1, 1], [], []>} : vector<8x128xf32>, vector<128x128xf32>, vector<8x128xf32> -> vector<8x128xf32>
    %9 = vector.broadcast %3 : vector<1x128xf32> to vector<8x128xf32>
    %10 = arith.addf %8, %9 : vector<8x128xf32>
    %cst_12 = arith.constant dense<0.000000e+00> : vector<8xf32>
    %11 = vector.multi_reduction <add>, %10, %cst_12 [1] : vector<8x128xf32> to vector<8xf32>
    %12 = vector.shape_cast %11 : vector<8xf32> to vector<8x1xf32>
    %cst_13 = arith.constant 3.125000e-02 : f32
    %13 = vector.broadcast %cst_13 : f32 to vector<8x1xf32>
    %14 = arith.mulf %12, %13 : vector<8x1xf32>
    %15 = arith.mulf %10, %10 : vector<8x128xf32>
    %cst_14 = arith.constant dense<0.000000e+00> : vector<8xf32>
    %16 = vector.multi_reduction <add>, %15, %cst_14 [1] : vector<8x128xf32> to vector<8xf32>
    %17 = vector.shape_cast %16 : vector<8xf32> to vector<8x1xf32>
    %cst_15 = arith.constant 3.125000e-02 : f32
    %18 = vector.broadcast %cst_15 : f32 to vector<8x1xf32>
    %19 = arith.mulf %17, %18 : vector<8x1xf32>
    %20 = arith.mulf %14, %14 : vector<8x1xf32>
    %21 = arith.subf %19, %20 : vector<8x1xf32>
    %cst_16 = arith.constant 0.000000e+00 : f32
    %22 = vector.broadcast %cst_16 : f32 to vector<8x1xf32>
    %23 = arith.maximumf %21, %22 : vector<8x1xf32>
    %24 = vector.broadcast %14 : vector<8x1xf32> to vector<8x128xf32>
    %25 = arith.subf %10, %24 : vector<8x128xf32>
    %cst_17 = arith.constant 9.99999974E-6 : f32
    %26 = vector.broadcast %cst_17 : f32 to vector<8x1xf32>
    %27 = arith.addf %23, %26 : vector<8x1xf32>
    %28 = math.rsqrt %27 : vector<8x1xf32>
    %29 = vector.broadcast %28 : vector<8x1xf32> to vector<8x128xf32>
    %30 = arith.mulf %25, %29 : vector<8x128xf32>
    %31 = vector.broadcast %5 : vector<1x128xf32> to vector<8x128xf32>
    %32 = arith.mulf %30, %31 : vector<8x128xf32>
    %33 = vector.broadcast %7 : vector<1x128xf32> to vector<8x128xf32>
    %34 = arith.addf %32, %33 : vector<8x128xf32>
    %cst_18 = arith.constant 0.000000e+00 : f32
    %35 = vector.broadcast %cst_18 : f32 to vector<8x128xf32>
    %36 = arith.maximumf %34, %35 : vector<8x128xf32>
    %c0_19 = arith.constant 0 : index
    %c0_20 = arith.constant 0 : index
    %c0_21 = arith.constant 0 : index
    %37 = vector.load %arg3[%c0_19, %c0_20, %c0_21] : memref<2x128x128xf32, #tpu.memory_space<vmem>>, vector<1x128x128xf32>
    %38 = vector.shape_cast %37 : vector<1x128x128xf32> to vector<128x128xf32>
    %c1 = arith.constant 1 : index
    %c0_22 = arith.constant 0 : index
    %c0_23 = arith.constant 0 : index
    %39 = vector.load %arg4[%c1, %c0_22, %c0_23] : memref<3x1x128xf32, #tpu.memory_space<vmem>>, vector<1x1x128xf32>
    %40 = vector.shape_cast %39 : vector<1x1x128xf32> to vector<1x128xf32>
    %c1_24 = arith.constant 1 : index
    %c0_25 = arith.constant 0 : index
    %c0_26 = arith.constant 0 : index
    %41 = vector.load %arg5[%c1_24, %c0_25, %c0_26] : memref<3x1x128xf32, #tpu.memory_space<vmem>>, vector<1x1x128xf32>
    %42 = vector.shape_cast %41 : vector<1x1x128xf32> to vector<1x128xf32>
    %c1_27 = arith.constant 1 : index
    %c0_28 = arith.constant 0 : index
    %c0_29 = arith.constant 0 : index
    %43 = vector.load %arg6[%c1_27, %c0_28, %c0_29] : memref<3x1x128xf32, #tpu.memory_space<vmem>>, vector<1x1x128xf32>
    %44 = vector.shape_cast %43 : vector<1x1x128xf32> to vector<1x128xf32>
    %cst_30 = arith.constant dense<0.000000e+00> : vector<8x128xf32>
    %45 = tpu.matmul %36, %38, %cst_30 {dimension_numbers = #tpu.dot_dimension_numbers<[1], [0], [0], [1], [0, 0, 1, 1], [], []>} : vector<8x128xf32>, vector<128x128xf32>, vector<8x128xf32> -> vector<8x128xf32>
    %46 = vector.broadcast %40 : vector<1x128xf32> to vector<8x128xf32>
    %47 = arith.addf %45, %46 : vector<8x128xf32>
    %cst_31 = arith.constant dense<0.000000e+00> : vector<8xf32>
    %48 = vector.multi_reduction <add>, %47, %cst_31 [1] : vector<8x128xf32> to vector<8xf32>
    %49 = vector.shape_cast %48 : vector<8xf32> to vector<8x1xf32>
    %cst_32 = arith.constant 3.125000e-02 : f32
    %50 = vector.broadcast %cst_32 : f32 to vector<8x1xf32>
    %51 = arith.mulf %49, %50 : vector<8x1xf32>
    %52 = arith.mulf %47, %47 : vector<8x128xf32>
    %cst_33 = arith.constant dense<0.000000e+00> : vector<8xf32>
    %53 = vector.multi_reduction <add>, %52, %cst_33 [1] : vector<8x128xf32> to vector<8xf32>
    %54 = vector.shape_cast %53 : vector<8xf32> to vector<8x1xf32>
    %cst_34 = arith.constant 3.125000e-02 : f32
    %55 = vector.broadcast %cst_34 : f32 to vector<8x1xf32>
    %56 = arith.mulf %54, %55 : vector<8x1xf32>
    %57 = arith.mulf %51, %51 : vector<8x1xf32>
    %58 = arith.subf %56, %57 : vector<8x1xf32>
    %cst_35 = arith.constant 0.000000e+00 : f32
    %59 = vector.broadcast %cst_35 : f32 to vector<8x1xf32>
    %60 = arith.maximumf %58, %59 : vector<8x1xf32>
    %61 = vector.broadcast %51 : vector<8x1xf32> to vector<8x128xf32>
    %62 = arith.subf %47, %61 : vector<8x128xf32>
    %cst_36 = arith.constant 9.99999974E-6 : f32
    %63 = vector.broadcast %cst_36 : f32 to vector<8x1xf32>
    %64 = arith.addf %60, %63 : vector<8x1xf32>
    %65 = math.rsqrt %64 : vector<8x1xf32>
    %66 = vector.broadcast %65 : vector<8x1xf32> to vector<8x128xf32>
    %67 = arith.mulf %62, %66 : vector<8x128xf32>
    %68 = vector.broadcast %42 : vector<1x128xf32> to vector<8x128xf32>
    %69 = arith.mulf %67, %68 : vector<8x128xf32>
    %70 = vector.broadcast %44 : vector<1x128xf32> to vector<8x128xf32>
    %71 = arith.addf %69, %70 : vector<8x128xf32>
    %cst_37 = arith.constant 0.000000e+00 : f32
    %72 = vector.broadcast %cst_37 : f32 to vector<8x128xf32>
    %73 = arith.maximumf %71, %72 : vector<8x128xf32>
    %74 = arith.addf %36, %73 : vector<8x128xf32>
    %c1_38 = arith.constant 1 : index
    %c0_39 = arith.constant 0 : index
    %c0_40 = arith.constant 0 : index
    %75 = vector.load %arg3[%c1_38, %c0_39, %c0_40] : memref<2x128x128xf32, #tpu.memory_space<vmem>>, vector<1x128x128xf32>
    %76 = vector.shape_cast %75 : vector<1x128x128xf32> to vector<128x128xf32>
    %c2 = arith.constant 2 : index
    %c0_41 = arith.constant 0 : index
    %c0_42 = arith.constant 0 : index
    %77 = vector.load %arg4[%c2, %c0_41, %c0_42] : memref<3x1x128xf32, #tpu.memory_space<vmem>>, vector<1x1x128xf32>
    %78 = vector.shape_cast %77 : vector<1x1x128xf32> to vector<1x128xf32>
    %c2_43 = arith.constant 2 : index
    %c0_44 = arith.constant 0 : index
    %c0_45 = arith.constant 0 : index
    %79 = vector.load %arg5[%c2_43, %c0_44, %c0_45] : memref<3x1x128xf32, #tpu.memory_space<vmem>>, vector<1x1x128xf32>
    %80 = vector.shape_cast %79 : vector<1x1x128xf32> to vector<1x128xf32>
    %c2_46 = arith.constant 2 : index
    %c0_47 = arith.constant 0 : index
    %c0_48 = arith.constant 0 : index
    %81 = vector.load %arg6[%c2_46, %c0_47, %c0_48] : memref<3x1x128xf32, #tpu.memory_space<vmem>>, vector<1x1x128xf32>
    %82 = vector.shape_cast %81 : vector<1x1x128xf32> to vector<1x128xf32>
    %cst_49 = arith.constant dense<0.000000e+00> : vector<8x128xf32>
    %83 = tpu.matmul %74, %76, %cst_49 {dimension_numbers = #tpu.dot_dimension_numbers<[1], [0], [0], [1], [0, 0, 1, 1], [], []>} : vector<8x128xf32>, vector<128x128xf32>, vector<8x128xf32> -> vector<8x128xf32>
    %84 = vector.broadcast %78 : vector<1x128xf32> to vector<8x128xf32>
    %85 = arith.addf %83, %84 : vector<8x128xf32>
    %cst_50 = arith.constant dense<0.000000e+00> : vector<8xf32>
    %86 = vector.multi_reduction <add>, %85, %cst_50 [1] : vector<8x128xf32> to vector<8xf32>
    %87 = vector.shape_cast %86 : vector<8xf32> to vector<8x1xf32>
    %cst_51 = arith.constant 3.125000e-02 : f32
    %88 = vector.broadcast %cst_51 : f32 to vector<8x1xf32>
    %89 = arith.mulf %87, %88 : vector<8x1xf32>
    %90 = arith.mulf %85, %85 : vector<8x128xf32>
    %cst_52 = arith.constant dense<0.000000e+00> : vector<8xf32>
    %91 = vector.multi_reduction <add>, %90, %cst_52 [1] : vector<8x128xf32> to vector<8xf32>
    %92 = vector.shape_cast %91 : vector<8xf32> to vector<8x1xf32>
    %cst_53 = arith.constant 3.125000e-02 : f32
    %93 = vector.broadcast %cst_53 : f32 to vector<8x1xf32>
    %94 = arith.mulf %92, %93 : vector<8x1xf32>
    %95 = arith.mulf %89, %89 : vector<8x1xf32>
    %96 = arith.subf %94, %95 : vector<8x1xf32>
    %cst_54 = arith.constant 0.000000e+00 : f32
    %97 = vector.broadcast %cst_54 : f32 to vector<8x1xf32>
    %98 = arith.maximumf %96, %97 : vector<8x1xf32>
    %99 = vector.broadcast %89 : vector<8x1xf32> to vector<8x128xf32>
    %100 = arith.subf %85, %99 : vector<8x128xf32>
    %cst_55 = arith.constant 9.99999974E-6 : f32
    %101 = vector.broadcast %cst_55 : f32 to vector<8x1xf32>
    %102 = arith.addf %98, %101 : vector<8x1xf32>
    %103 = math.rsqrt %102 : vector<8x1xf32>
    %104 = vector.broadcast %103 : vector<8x1xf32> to vector<8x128xf32>
    %105 = arith.mulf %100, %104 : vector<8x128xf32>
    %106 = vector.broadcast %80 : vector<1x128xf32> to vector<8x128xf32>
    %107 = arith.mulf %105, %106 : vector<8x128xf32>
    %108 = vector.broadcast %82 : vector<1x128xf32> to vector<8x128xf32>
    %109 = arith.addf %107, %108 : vector<8x128xf32>
    %cst_56 = arith.constant 0.000000e+00 : f32
    %110 = vector.broadcast %cst_56 : f32 to vector<8x128xf32>
    %111 = arith.maximumf %109, %110 : vector<8x128xf32>
    %112 = arith.addf %74, %111 : vector<8x128xf32>
    %c0_57 = arith.constant 0 : index
    %c0_58 = arith.constant 0 : index
    %113 = vector.load %arg7[%c0_57, %c0_58] : memref<128x128xf32, #tpu.memory_space<vmem>>, vector<128x128xf32>
    %cst_59 = arith.constant dense<0.000000e+00> : vector<8x128xf32>
    %114 = tpu.matmul %112, %113, %cst_59 {dimension_numbers = #tpu.dot_dimension_numbers<[1], [0], [0], [1], [0, 0, 1, 1], [], []>} : vector<8x128xf32>, vector<128x128xf32>, vector<8x128xf32> -> vector<8x128xf32>
    %c0_60 = arith.constant 0 : index
    %c0_61 = arith.constant 0 : index
    %115 = vector.load %arg8[%c0_60, %c0_61] : memref<1x128xf32, #tpu.memory_space<vmem>>, vector<1x128xf32>
    %116 = vector.broadcast %115 : vector<1x128xf32> to vector<8x128xf32>
    %117 = arith.addf %114, %116 : vector<8x128xf32>
    %c0_62 = arith.constant 0 : index
    %c0_63 = arith.constant 0 : index
    %118 = vector.load %arg9[%c0_62, %c0_63] : memref<8x128xf32, #tpu.memory_space<vmem>>, vector<8x128xf32>
    tpu.vector_store %arg9[%c0_62, %c0_63], %117 {strides = array<i32>} : memref<8x128xf32, #tpu.memory_space<vmem>>, vector<8x128xf32>,
    return
  }
  func.func @transform_0(%arg0: i32) -> (i32, i32) {
    %c0_i32 = arith.constant 0 : i32
    %c0_i32_0 = arith.constant 0 : i32
    return %arg0, %c0_i32 : i32, i32
  }
  func.func @transform_1(%arg0: i32) -> (i32, i32) {
    %c0_i32 = arith.constant 0 : i32
    %c0_i32_0 = arith.constant 0 : i32
    %c0_i32_1 = arith.constant 0 : i32
    return %c0_i32, %c0_i32_0 : i32, i32
  }
  func.func @transform_2(%arg0: i32) -> (i32, i32, i32) {
    %c0_i32 = arith.constant 0 : i32
    %c0_i32_0 = arith.constant 0 : i32
    %c0_i32_1 = arith.constant 0 : i32
    %c0_i32_2 = arith.constant 0 : i32
    return %c0_i32, %c0_i32_0, %c0_i32_1 : i32, i32, i32
  }
  func.func @transform_3(%arg0: i32) -> (i32, i32, i32) {
    %c0_i32 = arith.constant 0 : i32
    %c0_i32_0 = arith.constant 0 : i32
    %c0_i32_1 = arith.constant 0 : i32
    %c0_i32_2 = arith.constant 0 : i32
    return %c0_i32, %c0_i32_0, %c0_i32_1 : i32, i32, i32
  }
  func.func @transform_4(%arg0: i32) -> (i32, i32, i32) {
    %c0_i32 = arith.constant 0 : i32
    %c0_i32_0 = arith.constant 0 : i32
    %c0_i32_1 = arith.constant 0 : i32
    %c0_i32_2 = arith.constant 0 : i32
    return %c0_i32, %c0_i32_0, %c0_i32_1 : i32, i32, i32
  }
  func.func @transform_5(%arg0: i32) -> (i32, i32, i32) {
    %c0_i32 = arith.constant 0 : i32
    %c0_i32_0 = arith.constant 0 : i32
    %c0_i32_1 = arith.constant 0 : i32
    %c0_i32_2 = arith.constant 0 : i32
    return %c0_i32, %c0_i32_0, %c0_i32_1 : i32, i32, i32
  }
  func.func @transform_6(%arg0: i32) -> (i32, i32) {
    %c0_i32 = arith.constant 0 : i32
    %c0_i32_0 = arith.constant 0 : i32
    %c0_i32_1 = arith.constant 0 : i32
    return %c0_i32, %c0_i32_0 : i32, i32
  }
  func.func @transform_7(%arg0: i32) -> (i32, i32) {
    %c0_i32 = arith.constant 0 : i32
    %c0_i32_0 = arith.constant 0 : i32
    %c0_i32_1 = arith.constant 0 : i32
    return %c0_i32, %c0_i32_0 : i32, i32
  }
  func.func @transform_8(%arg0: i32) -> (i32, i32) {
    %c0_i32 = arith.constant 0 : i32
    %c0_i32_0 = arith.constant 0 : i32
    return %arg0, %c0_i32 : i32, i32
  }
}

</mosaic_0001>

<bundles_post_ra>
// kernel: tpu_custom_call.1
= control target key start
LH: loop header
LB: loop body
LE: loop exit
PB: predicated region body
PF: predicated region fallthrough
CT: control target
= control target key end

     0   :  { %13 = vsyncpa [#allocation3], 0  ;;  %s731_s0 = inlined_call_operand.hbm [shape: f32[8,128], index: 0, kind: input, shape index: {}]   ;;  %s732_s1 = inlined_call_operand.hbm [shape: f32[128,128], index: 1, kind: input, shape index: {}]   ;;  %s733_s2 = inlined_call_operand.hbm [shape: f32[2,128,128], index: 2, kind: input, shape index: {}]   ;;  %s734_s3 = inlined_call_operand.hbm [shape: f32[3,1,128], index: 3, kind: input, shape index: {}]   ;;  %s735_s4 = inlined_call_operand.vmem [shape: f32[3,1,128], index: 4, kind: input, shape index: {}]   ;;  %s736_s5 = inlined_call_operand.hbm [shape: f32[3,1,128], index: 5, kind: input, shape index: {}]   ;;  %s737_s6 = inlined_call_operand.hbm [shape: f32[128,128], index: 6, kind: input, shape index: {}]   ;;  %s738_s7 = inlined_call_operand.vmem [shape: f32[1,128], index: 7, kind: input, shape index: {}]   ;;  %s739_s8 = inlined_call_operand.hbm [shape: f32[8,128], index: 8, kind: output, shape index: {}]  }
   0x1   :  { %14 = vsyncpa [#allocation6], 0 }
   0x2   :  { %15 = vsyncpa [#allocation9], 0 }
   0x3   :  { %16 = vsyncpa [#allocation12], 0  ;;  %s33_s29 = sshll.u32 %s732_s1, 4  ;;  %s34_s29 = int_to_ptr.hbm [resolvable:$true] %s33_s29 }
   0x4   :  { %17 = vsyncpa [#allocation4], 0  ;;  %s622_s30 = smov [#allocation5]   ;;  %s59_s12 = sshll.u32 %s734_s3, 4  ;;  %s60_s12 = int_to_ptr.hbm [resolvable:$true] %s59_s12 }
   0x5   :  { %s35_s9 = sshll.u32 %s622_s30, 4  ;;  %s623_s13 = smov 128   ;;  %s36_s9 = int_to_ptr.vmem [resolvable:$true] %s35_s9 }
   0x6   :  { %s624_s14 = smov 8   ;;  %s625_s15 = smov [#allocation8]  }
   0x7   :  { %41 = dma.hbm_to_vmem [thread:$0]  %s34_s29, 2048, %s36_s9, [#allocation6], %s623_s13, %s623_s13, %s624_s14  }
   0x8   :  { %s61_s16 = sshll.u32 %s625_s15, 4  ;;  %s626_s1 = smov 16   ;;  %s62_s16 = int_to_ptr.vmem [resolvable:$true] %s61_s16 }
   0x9   :  { %s627_s17 = smov 1   ;;  %s23_s20 = sshll.u32 %s731_s0, 4  ;;  %s24_s20 = int_to_ptr.hbm [resolvable:$true] %s23_s20 }
   0xa   :  { %67 = dma.hbm_to_vmem [thread:$0]  %s60_s12, 48, %s62_s16, [#allocation9], %s626_s1, %s626_s1, %s627_s17  }
   0xb   :  { %s628_s21 = smov [#allocation2]   ;;  %s46_s24 = sshll.u32 %s733_s2, 4  ;;  %s47_s24 = int_to_ptr.hbm [resolvable:$true] %s46_s24 }
   0xc   :  { %s25_s3 = sshll.u32 %s628_s21, 4  ;;  %s629_s25 = smov [#allocation7]   ;;  %s26_s3 = int_to_ptr.vmem [resolvable:$true] %s25_s3 }
   0xd   :  { %28 = dma.hbm_to_vmem [thread:$0]  %s24_s20, 128, %s26_s3, [#allocation3]  }
   0xe   :  { %s48_s26 = sshll.u32 %s629_s25, 4  ;;  %s74_s29 = sshll.u32 %s736_s5, 4  ;;  %s49_s26 = int_to_ptr.vmem [resolvable:$true] %s48_s26  ;;  %s75_s29 = int_to_ptr.hbm [resolvable:$true] %s74_s29 }
   0xf   :  { %54 = dma.hbm_to_vmem [thread:$0]  %s47_s24, 4096, %s49_s26, [#allocation6], %s623_s13, %s623_s13, %s624_s14  }
  0x10   :  { %s87_s9 = sshll.u32 %s737_s6, 4  ;;  %s630_s10 = smov [#allocation10]   ;;  %s88_s9 = int_to_ptr.hbm [resolvable:$true] %s87_s9 }
  0x11   :  { %s76_s2 = sshll.u32 %s630_s10, 4  ;;  %s631_s11 = smov [#allocation11]   ;;  %s77_s2 = int_to_ptr.vmem [resolvable:$true] %s76_s2 }
  0x12   :  { %82 = dma.hbm_to_vmem [thread:$0]  %s75_s29, 48, %s77_s2, [#allocation9], %s626_s1, %s626_s1, %s627_s17  }
  0x13   :  { %s89_s12 = sshll.u32 %s631_s11, 4  ;;  %s90_s12 = int_to_ptr.vmem [resolvable:$true] %s89_s12 }
  0x14   :  { %95 = dma.hbm_to_vmem [thread:$0]  %s88_s9, 2048, %s90_s12, [#allocation12], %s623_s13, %s623_s13, %s624_s14  }
  0x15   :  { %612 = dma.done.wait [#allocation3], 128  }
  0x16   :  { %613 = vsyncadd [#allocation3], 4294967168 }
  0x17   :  { %614 = dma.done.wait [#allocation6], 6144  }
  0x18   :  { %615 = vsyncadd [#allocation6], 4294961152 }
  0x19   :  { %616 = dma.done.wait [#allocation9], 96  }
  0x1a   :  { %617 = vsyncadd [#allocation9], 4294967200 }
  0x1b   :  { %618 = dma.done.wait [#allocation12], 2048  }
  0x1c   :  { %619 = vsyncadd [#allocation12], 4294965248  ;;  %v138_v0 = vld [vmem:[#allocation5 + $0x78] sm:$0xff]  ;;  %v137_v1 = vld [vmem:[#allocation5 + $0x70] sm:$0xff]  ;;  %s632_s18 = smov [#allocation13]   ;;  %s402_s3 = sshll.u32 %s739_s8, 4  ;;  %s403_s3 = int_to_ptr.hbm [resolvable:$true] %s402_s3 }
  0x1d   :  { %145 = vmatpush.msra.mxu0 %v138_v0  ;;  %v136_v2 = vld [vmem:[#allocation5 + $0x68] sm:$0xff]  ;;  %v135_v3 = vld [vmem:[#allocation5 + $0x60] sm:$0xff]  ;;  %v134_v4 = vld [vmem:[#allocation5 + $0x58] sm:$0xff]  ;;  %s400_s19 = sshll.u32 %s632_s18, 4  ;;  %s401_s19 = int_to_ptr.vmem [resolvable:$true] %s400_s19 }
  0x1e   :  { %v133_v5 = vld [vmem:[#allocation5 + $0x50] sm:$0xff]  ;;  %v132_v6 = vld [vmem:[#allocation5 + $0x48] sm:$0xff]  ;;  %v131_v7 = vld [vmem:[#allocation5 + $0x40] sm:$0xff] }
  0x1f   :  { %146 = vmatpush.msra.mxu0 %v137_v1  ;;  %v130_v8 = vld [vmem:[#allocation5 + $0x38] sm:$0xff]  ;;  %v129_v9 = vld [vmem:[#allocation5 + $0x30] sm:$0xff]  ;;  %v128_v10 = vld [vmem:[#allocation5 + $0x28] sm:$0xff] }
  0x20   :  { %v127_v11 = vld [vmem:[#allocation5 + $0x20] sm:$0xff]  ;;  %v126_v12 = vld [vmem:[#allocation5 + $0x18] sm:$0xff]  ;;  %v125_v13 = vld [vmem:[#allocation5 + $0x10] sm:$0xff] }
  0x21   :  { %147 = vmatpush.msra.mxu0 %v136_v2  ;;  %v124_v14 = vld [vmem:[#allocation5 + $0x8] sm:$0xff]  ;;  %v123_v15 = vld [vmem:[#allocation5] sm:$0xff]  ;;  %v122_v16 = vld [vmem:[#allocation2] sm:$0xff] }
  0x22   :  { %v428_v17 = vld [vmem:[#allocation8] ss:$0 sm:$0xff]  ;;  %v212_v21 = vld [vmem:[#allocation7 + $0x78] sm:$0xff]  ;;  %v211_v22 = vld [vmem:[#allocation7 + $0x70] sm:$0xff] }
  0x23   :  { %148 = vmatpush.msra.mxu0 %v135_v3  ;;  %222 = vmatpush.msra.mxu1 %v212_v21  ;;  %v210_v23 = vld [vmem:[#allocation7 + $0x68] sm:$0xff]  ;;  %v209_v24 = vld [vmem:[#allocation7 + $0x60] sm:$0xff]  ;;  %v208_v25 = vld [vmem:[#allocation7 + $0x58] sm:$0xff] }
  0x24   :  { %v207_v26 = vld [vmem:[#allocation7 + $0x50] sm:$0xff]  ;;  %v206_v27 = vld [vmem:[#allocation7 + $0x48] sm:$0xff]  ;;  %v205_v28 = vld [vmem:[#allocation7 + $0x40] sm:$0xff] }
  0x25   :  { %149 = vmatpush.msra.mxu0 %v134_v4  ;;  %223 = vmatpush.msra.mxu1 %v211_v22  ;;  %v204_v29 = vld [vmem:[#allocation7 + $0x38] sm:$0xff]  ;;  %v203_v30 = vld [vmem:[#allocation7 + $0x30] sm:$0xff]  ;;  %v202_v31 = vld [vmem:[#allocation7 + $0x28] sm:$0xff] }
  0x26   :  { %v201_v32 = vld [vmem:[#allocation7 + $0x20] sm:$0xff]  ;;  %v200_v34 = vld [vmem:[#allocation7 + $0x18] sm:$0xff]  ;;  %v199_v35 = vld [vmem:[#allocation7 + $0x10] sm:$0xff] }
  0x27   :  { %150 = vmatpush.msra.mxu0 %v133_v5  ;;  %224 = vmatpush.msra.mxu1 %v210_v23  ;;  %v198_v37 = vld [vmem:[#allocation7 + $0x8] sm:$0xff]  ;;  %v197_v38 = vld [vmem:[#allocation7] sm:$0xff]  ;;  %v429_v52 = vld [vmem:[%s735_s4] ss:$0 sm:$0xff] }
  0x28   :  { %v430_v55 = vld [vmem:[#allocation10] ss:$0 sm:$0xff]  ;;  %v431_v59 = vld [vmem:[#allocation8 + $0x1] ss:$0 sm:$0xff]  ;;  %v291_v63 = vld [vmem:[#allocation7 + $0xf8] sm:$0xff] }
  0x29   :  { %151 = vmatpush.msra.mxu0 %v132_v6  ;;  %225 = vmatpush.msra.mxu1 %v209_v24  ;;  %v290_v0 = vld [vmem:[#allocation7 + $0xf0] sm:$0xff]  ;;  %v289_v1 = vld [vmem:[#allocation7 + $0xe8] sm:$0xff]  ;;  %v288_v2 = vld [vmem:[#allocation7 + $0xe0] sm:$0xff] }
  0x2a   :  { %301 = vmatpush.msra.mxu2 %v291_v63  ;;  %v287_v3 = vld [vmem:[#allocation7 + $0xd8] sm:$0xff]  ;;  %v286_v4 = vld [vmem:[#allocation7 + $0xd0] sm:$0xff]  ;;  %v285_v5 = vld [vmem:[#allocation7 + $0xc8] sm:$0xff] }
  0x2b   :  { %152 = vmatpush.msra.mxu0 %v131_v7  ;;  %226 = vmatpush.msra.mxu1 %v208_v25  ;;  %v284_v6 = vld [vmem:[#allocation7 + $0xc0] sm:$0xff]  ;;  %v283_v7 = vld [vmem:[#allocation7 + $0xb8] sm:$0xff] }
  0x2c   :  { %302 = vmatpush.msra.mxu2 %v290_v0 }
  0x2d   :  { %153 = vmatpush.msra.mxu0 %v130_v8  ;;  %227 = vmatpush.msra.mxu1 %v207_v26  ;;  %v282_v8 = vld [vmem:[#allocation7 + $0xb0] sm:$0xff] }
  0x2e   :  { %303 = vmatpush.msra.mxu2 %v289_v1 }
  0x2f   :  { %154 = vmatpush.msra.mxu0 %v129_v9  ;;  %228 = vmatpush.msra.mxu1 %v206_v27 }
  0x30   :  { %304 = vmatpush.msra.mxu2 %v288_v2 }
  0x31   :  { %155 = vmatpush.msra.mxu0 %v128_v10  ;;  %229 = vmatpush.msra.mxu1 %v205_v28  ;;  %v281_v10 = vld [vmem:[#allocation7 + $0xa8] sm:$0xff] }
  0x32   :  { %305 = vmatpush.msra.mxu2 %v287_v3 }
  0x33   :  { %156 = vmatpush.msra.mxu0 %v127_v11  ;;  %230 = vmatpush.msra.mxu1 %v204_v29  ;;  %v280_v11 = vld [vmem:[#allocation7 + $0xa0] sm:$0xff] }
  0x34   :  { %306 = vmatpush.msra.mxu2 %v286_v4 }
  0x35   :  { %157 = vmatpush.msra.mxu0 %v126_v12  ;;  %231 = vmatpush.msra.mxu1 %v203_v30  ;;  %v279_v12 = vld [vmem:[#allocation7 + $0x98] sm:$0xff] }
  0x36   :  { %307 = vmatpush.msra.mxu2 %v285_v5  ;;  %v432_v30 = vld [vmem:[%s735_s4 + $0x1] ss:$0 sm:$0xff] }
  0x37   :  { %158 = vmatpush.msra.mxu0 %v125_v13  ;;  %232 = vmatpush.msra.mxu1 %v202_v31 }
  0x38   :  { %308 = vmatpush.msra.mxu2 %v284_v6 }
  0x39   :  { %159 = vmatpush.msra.mxu0 %v124_v14  ;;  %233 = vmatpush.msra.mxu1 %v201_v32  ;;  %v278_v14 = vld [vmem:[#allocation7 + $0x90] sm:$0xff] }
  0x3a   :  { %309 = vmatpush.msra.mxu2 %v283_v7 }
  0x3b   :  { %160 = vmatpush.msra.mxu0 %v123_v15  ;;  %234 = vmatpush.msra.mxu1 %v200_v34  ;;  %v277_v15 = vld [vmem:[#allocation7 + $0x88] sm:$0xff] }
  0x3c   :  { %161 = vmatmul.f32.vlgmr.msra.gmra.mxu0 %v122_v16  ;;  %310 = vmatpush.msra.mxu2 %v282_v8 }
  0x3d   :  { %235 = vmatpush.msra.mxu1 %v199_v35 }
  0x3e   :  { %311 = vmatpush.msra.mxu2 %v281_v10 }
  0x3f   :  { %236 = vmatpush.msra.mxu1 %v198_v37 }
  0x40   :  { %312 = vmatpush.msra.mxu2 %v280_v11 }
  0x41   :  { %237 = vmatpush.msra.mxu1 %v197_v38  ;;  %v434_v38 = vld [vmem:[#allocation8 + $0x2] ss:$0 sm:$0xff] }
  0x42   :  { %313 = vmatpush.msra.mxu2 %v279_v12  ;;  %v436_v12 = vld [vmem:[#allocation10 + $0x2] ss:$0 sm:$0xff] }
  0x44   :  { %314 = vmatpush.msra.mxu2 %v278_v14 }
  0x46   :  { %315 = vmatpush.msra.mxu2 %v277_v15 }
  0xb9   :  { %v162_v18 = vpop.f32.mrf.mxu0 }
  0xba   :  { %v163_v19 = vadd.f32 %v428_v17, %v162_v18 }
  0xbc   :  { %165 = vadd.xlane.f32.xlu0 %v163_v19  ;;  %v168_v20 = vmul.f32 %v163_v19, %v163_v19 }
  0xc4   :  { %169 = vadd.xlane.f32.xlu0 %v168_v20 }
 0x12f   :  { %v166_v33 = vpop.xlane.xlu0 %165 }
 0x130   :  { %v167_v36 = vmul.f32 0.03125, %v166_v33  ;;  %v433_v33 = vld [vmem:[#allocation10 + $0x1] ss:$0 sm:$0xff] }
 0x132   :  { %v172_v40 = vmul.f32 %v167_v36, %v167_v36  ;;  %v175_v51 = vsub.f32 %v163_v19, %v167_v36  ;;  %v276_v19 = vld [vmem:[#allocation7 + $0x80] sm:$0xff] }
 0x133   :  { %316 = vmatpush.msra.mxu2 %v276_v19 }
 0x137   :  { %v170_v39 = vpop.xlane.xlu0 %169 }
 0x138   :  { %v171_v41 = vmul.f32 0.03125, %v170_v39 }
 0x13a   :  { %v173_v42 = vsub.f32 %v171_v41, %v172_v40 }
 0x13c   :  { %v174_v43 = vmax.f32 %v173_v42, 0.0  ;;  %v369_v42 = vld [vmem:[#allocation11 + $0x78] sm:$0xff] }
 0x13d   :  { %374 = vmatpush.msra.mxu3 %v369_v42 }
 0x13e   :  { %v176_v44 = vadd.f32 1e-05, %v174_v43  ;;  %v368_v43 = vld [vmem:[#allocation11 + $0x70] sm:$0xff] }
 0x13f   :  { %375 = vmatpush.msra.mxu3 %v368_v43 }
 0x140   :  { %438 = vrsqrt.f32 %v176_v44  ;;  %vm183_vm1 = vweird.f32 %v176_v44 }
 0x146   :  { %v439_v45 = vpop.eup %438 }
 0x147   :  { %v178_v46 = vmul.f32 %v439_v45, %v176_v44  ;;  %vm184_vm0 = vweird.f32 %v439_v45  ;;  %v367_v44 = vld [vmem:[#allocation11 + $0x68] sm:$0xff] }
 0x148   :  { %vm185_vm2 = vmor %vm183_vm1, %vm184_vm0  ;;  %376 = vmatpush.msra.mxu3 %v367_v44 }
 0x149   :  { %v179_v47 = vmul.f32 %v439_v45, %v178_v46  ;;  %v365_v46 = vld [vmem:[#allocation11 + $0x58] sm:$0xff] }
 0x14b   :  { %v180_v48 = vmul.f32 0.5, %v179_v47  ;;  %v364_v47 = vld [vmem:[#allocation11 + $0x50] sm:$0xff] }
 0x14d   :  { %v181_v49 = vsub.f32 1.5, %v180_v48  ;;  %v363_v48 = vld [vmem:[#allocation11 + $0x48] sm:$0xff] }
 0x14f   :  { %v182_v50 = vmul.f32 %v439_v45, %v181_v49  ;;  %v362_v49 = vld [vmem:[#allocation11 + $0x40] sm:$0xff] }
 0x151   :  { %v186_v53 = vsel %vm185_vm2, %v439_v45, %v182_v50  ;;  %v366_v45 = vld [vmem:[#allocation11 + $0x60] sm:$0xff]  ;;  %v361_v50 = vld [vmem:[#allocation11 + $0x38] sm:$0xff] }
 0x152   :  { %v187_v54 = vmul.f32 %v186_v53, %v175_v51  ;;  %377 = vmatpush.msra.mxu3 %v366_v45  ;;  %v360_v51 = vld [vmem:[#allocation11 + $0x30] sm:$0xff]  ;;  %v359_v53 = vld [vmem:[#allocation11 + $0x28] sm:$0xff] }
 0x154   :  { %v191_v56 = vmul.f32 %v429_v52, %v187_v54  ;;  %378 = vmatpush.msra.mxu3 %v365_v46  ;;  %v358_v54 = vld [vmem:[#allocation11 + $0x20] sm:$0xff] }
 0x156   :  { %v708_v57 = vadd.f32 %v430_v55, %v191_v56  ;;  %379 = vmatpush.msra.mxu3 %v364_v47  ;;  %v357_v55 = vld [vmem:[#allocation11 + $0x18] sm:$0xff] }
 0x158   :  { %v196_v58 = vmax.f32 %v708_v57, 0.0  ;;  %380 = vmatpush.msra.mxu3 %v363_v48  ;;  %v356_v57 = vld [vmem:[#allocation11 + $0x10] sm:$0xff] }
 0x15a   :  { %238 = vmatmul.f32.vlgmr.msra.gmra.mxu1 %v196_v58  ;;  %381 = vmatpush.msra.mxu3 %v362_v49 }
 0x15c   :  { %382 = vmatpush.msra.mxu3 %v361_v50 }
 0x15e   :  { %383 = vmatpush.msra.mxu3 %v360_v51 }
 0x160   :  { %384 = vmatpush.msra.mxu3 %v359_v53 }
 0x162   :  { %385 = vmatpush.msra.mxu3 %v358_v54 }
 0x164   :  { %386 = vmatpush.msra.mxu3 %v357_v55 }
 0x166   :  { %387 = vmatpush.msra.mxu3 %v356_v57 }
 0x1d7   :  { %v239_v60 = vpop.f32.mrf.mxu1 }
 0x1d8   :  { %v240_v61 = vadd.f32 %v431_v59, %v239_v60 }
 0x1da   :  { %242 = vadd.xlane.f32.xlu1 %v240_v61  ;;  %v245_v62 = vmul.f32 %v240_v61, %v240_v61 }
 0x1e2   :  { %246 = vadd.xlane.f32.xlu1 %v245_v62  ;;  %v354_v62 = vld [vmem:[#allocation11] sm:$0xff] }
 0x24d   :  { %v243_v9 = vpop.xlane.xlu1 %242 }
 0x24e   :  { %v244_v13 = vmul.f32 0.03125, %v243_v9  ;;  %v435_v9 = vld [vmem:[%s735_s4 + $0x2] ss:$0 sm:$0xff] }
 0x250   :  { %v249_v17 = vmul.f32 %v244_v13, %v244_v13  ;;  %v252_v29 = vsub.f32 %v240_v61, %v244_v13 }
 0x255   :  { %v247_v16 = vpop.xlane.xlu1 %246 }
 0x256   :  { %v248_v18 = vmul.f32 0.03125, %v247_v16 }
 0x258   :  { %v250_v20 = vsub.f32 %v248_v18, %v249_v17  ;;  %v437_v17 = vld [vmem:[%s738_s7] ss:$0 sm:$0xff] }
 0x25a   :  { %v251_v21 = vmax.f32 %v250_v20, 0.0 }
 0x25c   :  { %v253_v22 = vadd.f32 1e-05, %v251_v21 }
 0x25e   :  { %440 = vrsqrt.f32 %v253_v22  ;;  %vm260_vm4 = vweird.f32 %v253_v22 }
 0x264   :  { %v441_v23 = vpop.eup %440 }
 0x265   :  { %v255_v24 = vmul.f32 %v441_v23, %v253_v22  ;;  %vm261_vm3 = vweird.f32 %v441_v23 }
 0x266   :  { %vm262_vm5 = vmor %vm260_vm4, %vm261_vm3 }
 0x267   :  { %v256_v25 = vmul.f32 %v441_v23, %v255_v24 }
 0x269   :  { %v257_v26 = vmul.f32 0.5, %v256_v25 }
 0x26b   :  { %v258_v27 = vsub.f32 1.5, %v257_v26 }
 0x26d   :  { %v259_v28 = vmul.f32 %v441_v23, %v258_v27 }
 0x26f   :  { %v263_v31 = vsel %vm262_vm5, %v441_v23, %v259_v28 }
 0x270   :  { %v264_v32 = vmul.f32 %v263_v31, %v252_v29 }
 0x272   :  { %v268_v34 = vmul.f32 %v432_v30, %v264_v32 }
 0x274   :  { %v272_v35 = vadd.f32 %v433_v33, %v268_v34 }
 0x276   :  { %v273_v36 = vmax.f32 %v272_v35, 0.0 }
 0x278   :  { %v718_v37 = vadd.f32 %v273_v36, %v196_v58  ;;  %v355_v58 = vld [vmem:[#allocation11 + $0x8] sm:$0xff] }
 0x279   :  { %388 = vmatpush.msra.mxu3 %v355_v58 }
 0x27a   :  { %317 = vmatmul.f32.vlgmr.msra.gmra.mxu2 %v718_v37 }
 0x27b   :  { %389 = vmatpush.msra.mxu3 %v354_v62 }
 0x2fd   :  { %v318_v39 = vpop.f32.mrf.mxu2 }
 0x2fe   :  { %v319_v40 = vadd.f32 %v434_v38, %v318_v39 }
 0x300   :  { %321 = vadd.xlane.f32.xlu2 %v319_v40  ;;  %v324_v41 = vmul.f32 %v319_v40, %v319_v40 }
 0x308   :  { %325 = vadd.xlane.f32.xlu2 %v324_v41 }
 0x373   :  { %v322_v52 = vpop.xlane.xlu2 %321 }
 0x374   :  { %v323_v56 = vmul.f32 0.03125, %v322_v52 }
 0x376   :  { %v328_v60 = vmul.f32 %v323_v56, %v323_v56  ;;  %v331_v8 = vsub.f32 %v319_v40, %v323_v56 }
 0x37b   :  { %v326_v59 = vpop.xlane.xlu2 %325 }
 0x37c   :  { %v327_v61 = vmul.f32 0.03125, %v326_v59 }
 0x37e   :  { %v329_v63 = vsub.f32 %v327_v61, %v328_v60 }
 0x380   :  { %v330_v0 = vmax.f32 %v329_v63, 0.0 }
 0x382   :  { %v332_v1 = vadd.f32 1e-05, %v330_v0 }
 0x384   :  { %442 = vrsqrt.f32 %v332_v1  ;;  %vm339_vm7 = vweird.f32 %v332_v1 }
 0x38a   :  { %v443_v2 = vpop.eup %442 }
 0x38b   :  { %v334_v3 = vmul.f32 %v443_v2, %v332_v1  ;;  %vm340_vm6 = vweird.f32 %v443_v2 }
 0x38c   :  { %vm341_vm8 = vmor %vm339_vm7, %vm340_vm6 }
 0x38d   :  { %v335_v4 = vmul.f32 %v443_v2, %v334_v3 }
 0x38f   :  { %v336_v5 = vmul.f32 0.5, %v335_v4 }
 0x391   :  { %v337_v6 = vsub.f32 1.5, %v336_v5 }
 0x393   :  { %v338_v7 = vmul.f32 %v443_v2, %v337_v6 }
 0x395   :  { %v342_v10 = vsel %vm341_vm8, %v443_v2, %v338_v7 }
 0x396   :  { %v343_v11 = vmul.f32 %v342_v10, %v331_v8 }
 0x398   :  { %v347_v13 = vmul.f32 %v435_v9, %v343_v11 }
 0x39a   :  { %v351_v14 = vadd.f32 %v436_v12, %v347_v13 }
 0x39c   :  { %v352_v15 = vmax.f32 %v351_v14, 0.0 }
 0x39e   :  { %v353_v16 = vadd.f32 %v352_v15, %v718_v37 }
 0x3a0   :  { %390 = vmatmul.f32.vlgmr.msra.gmra.mxu3 %v353_v16 }
 0x423   :  { %v391_v18 = vpop.f32.mrf.mxu3 }
 0x424   :  { %v392_v19 = vadd.f32 %v437_v17, %v391_v18 }
 0x426   :  { %394 = vst [vmem:[#allocation13] sm:$0xff] %v392_v19 }
 0x427   :  { %405 = dma.vmem_to_hbm [thread:$0]  %s401_s19, 128, %s403_s3, [#allocation4]  }
 0x428   :  { %620 = dma.done.wait [#allocation4], 128  }
 0x429   :  { %621 = vsyncadd [#allocation4], 4294967168 }
 0x42a   :  { %410 = vsyncpa [#allocation3], 1 }
 0x42b   :  { %411 = vsyncpa [#allocation6], 1 }
 0x42c   :  { %412 = vsyncpa [#allocation9], 1 }
 0x42d   :  { %413 = vsyncpa [#allocation12], 1 }
 0x42e   :  { %414 = vsyncpa [#allocation4], 1 }

// kernel: tpu_custom_call.1
= control target key start
LH: loop header
LB: loop body
LE: loop exit
PB: predicated region body
PF: predicated region fallthrough
CT: control target
= control target key end

     0   :  { %13 = vsyncpa [#allocation3], 0  ;;  %s731_s0 = inlined_call_operand.hbm [shape: f32[8,128], index: 0, kind: input, shape index: {}]   ;;  %s732_s1 = inlined_call_operand.hbm [shape: f32[128,128], index: 1, kind: input, shape index: {}]   ;;  %s733_s2 = inlined_call_operand.hbm [shape: f32[2,128,128], index: 2, kind: input, shape index: {}]   ;;  %s734_s3 = inlined_call_operand.hbm [shape: f32[3,1,128], index: 3, kind: input, shape index: {}]   ;;  %s735_s4 = inlined_call_operand.vmem [shape: f32[3,1,128], index: 4, kind: input, shape index: {}]   ;;  %s736_s5 = inlined_call_operand.hbm [shape: f32[3,1,128], index: 5, kind: input, shape index: {}]   ;;  %s737_s6 = inlined_call_operand.hbm [shape: f32[128,128], index: 6, kind: input, shape index: {}]   ;;  %s738_s7 = inlined_call_operand.vmem [shape: f32[1,128], index: 7, kind: input, shape index: {}]   ;;  %s739_s8 = inlined_call_operand.hbm [shape: f32[8,128], index: 8, kind: output, shape index: {}]  }
   0x1   :  { %14 = vsyncpa [#allocation6], 0 }
   0x2   :  { %15 = vsyncpa [#allocation9], 0 }
   0x3   :  { %16 = vsyncpa [#allocation12], 0  ;;  %s33_s29 = sshll.u32 %s732_s1, 4  ;;  %s34_s29 = int_to_ptr.hbm [resolvable:$true] %s33_s29 }
   0x4   :  { %17 = vsyncpa [#allocation4], 0  ;;  %s622_s30 = smov [#allocation5]   ;;  %s59_s12 = sshll.u32 %s734_s3, 4  ;;  %s60_s12 = int_to_ptr.hbm [resolvable:$true] %s59_s12 }
   0x5   :  { %s35_s9 = sshll.u32 %s622_s30, 4  ;;  %s623_s13 = smov 128   ;;  %s36_s9 = int_to_ptr.vmem [resolvable:$true] %s35_s9 }
   0x6   :  { %s624_s14 = smov 8   ;;  %s625_s15 = smov [#allocation8]  }
   0x7   :  { %41 = dma.hbm_to_vmem [thread:$0]  %s34_s29, 2048, %s36_s9, [#allocation6], %s623_s13, %s623_s13, %s624_s14  }
   0x8   :  { %s61_s16 = sshll.u32 %s625_s15, 4  ;;  %s626_s1 = smov 16   ;;  %s62_s16 = int_to_ptr.vmem [resolvable:$true] %s61_s16 }
   0x9   :  { %s627_s17 = smov 1   ;;  %s23_s20 = sshll.u32 %s731_s0, 4  ;;  %s24_s20 = int_to_ptr.hbm [resolvable:$true] %s23_s20 }
   0xa   :  { %67 = dma.hbm_to_vmem [thread:$0]  %s60_s12, 48, %s62_s16, [#allocation9], %s626_s1, %s626_s1, %s627_s17  }
   0xb   :  { %s628_s21 = smov [#allocation2]   ;;  %s46_s24 = sshll.u32 %s733_s2, 4  ;;  %s47_s24 = int_to_ptr.hbm [resolvable:$true] %s46_s24 }
   0xc   :  { %s25_s3 = sshll.u32 %s628_s21, 4  ;;  %s629_s25 = smov [#allocation7]   ;;  %s26_s3 = int_to_ptr.vmem [resolvable:$true] %s25_s3 }
   0xd   :  { %28 = dma.hbm_to_vmem [thread:$0]  %s24_s20, 128, %s26_s3, [#allocation3]  }
   0xe   :  { %s48_s26 = sshll.u32 %s629_s25, 4  ;;  %s74_s29 = sshll.u32 %s736_s5, 4  ;;  %s49_s26 = int_to_ptr.vmem [resolvable:$true] %s48_s26  ;;  %s75_s29 = int_to_ptr.hbm [resolvable:$true] %s74_s29 }
   0xf   :  { %54 = dma.hbm_to_vmem [thread:$0]  %s47_s24, 4096, %s49_s26, [#allocation6], %s623_s13, %s623_s13, %s624_s14  }
  0x10   :  { %s87_s9 = sshll.u32 %s737_s6, 4  ;;  %s630_s10 = smov [#allocation10]   ;;  %s88_s9 = int_to_ptr.hbm [resolvable:$true] %s87_s9 }
  0x11   :  { %s76_s2 = sshll.u32 %s630_s10, 4  ;;  %s631_s11 = smov [#allocation11]   ;;  %s77_s2 = int_to_ptr.vmem [resolvable:$true] %s76_s2 }
  0x12   :  { %82 = dma.hbm_to_vmem [thread:$0]  %s75_s29, 48, %s77_s2, [#allocation9], %s626_s1, %s626_s1, %s627_s17  }
  0x13   :  { %s89_s12 = sshll.u32 %s631_s11, 4  ;;  %s90_s12 = int_to_ptr.vmem [resolvable:$true] %s89_s12 }
  0x14   :  { %95 = dma.hbm_to_vmem [thread:$0]  %s88_s9, 2048, %s90_s12, [#allocation12], %s623_s13, %s623_s13, %s624_s14  }
  0x15   :  { %612 = dma.done.wait [#allocation3], 128  }
  0x16   :  { %613 = vsyncadd [#allocation3], 4294967168 }
  0x17   :  { %614 = dma.done.wait [#allocation6], 6144  }
  0x18   :  { %615 = vsyncadd [#allocation6], 4294961152 }
  0x19   :  { %616 = dma.done.wait [#allocation9], 96  }
  0x1a   :  { %617 = vsyncadd [#allocation9], 4294967200 }
  0x1b   :  { %618 = dma.done.wait [#allocation12], 2048  }
  0x1c   :  { %619 = vsyncadd [#allocation12], 4294965248  ;;  %v138_v0 = vld [vmem:[#allocation5 + $0x78] sm:$0xff]  ;;  %v137_v1 = vld [vmem:[#allocation5 + $0x70] sm:$0xff]  ;;  %s632_s18 = smov [#allocation13]   ;;  %s402_s3 = sshll.u32 %s739_s8, 4  ;;  %s403_s3 = int_to_ptr.hbm [resolvable:$true] %s402_s3 }
  0x1d   :  { %145 = vmatpush.msra.mxu0 %v138_v0  ;;  %v136_v2 = vld [vmem:[#allocation5 + $0x68] sm:$0xff]  ;;  %v135_v3 = vld [vmem:[#allocation5 + $0x60] sm:$0xff]  ;;  %v134_v4 = vld [vmem:[#allocation5 + $0x58] sm:$0xff]  ;;  %s400_s19 = sshll.u32 %s632_s18, 4  ;;  %s401_s19 = int_to_ptr.vmem [resolvable:$true] %s400_s19 }
  0x1e   :  { %v133_v5 = vld [vmem:[#allocation5 + $0x50] sm:$0xff]  ;;  %v132_v6 = vld [vmem:[#allocation5 + $0x48] sm:$0xff]  ;;  %v131_v7 = vld [vmem:[#allocation5 + $0x40] sm:$0xff] }
  0x1f   :  { %146 = vmatpush.msra.mxu0 %v137_v1  ;;  %v130_v8 = vld [vmem:[#allocation5 + $0x38] sm:$0xff]  ;;  %v129_v9 = vld [vmem:[#allocation5 + $0x30] sm:$0xff]  ;;  %v128_v10 = vld [vmem:[#allocation5 + $0x28] sm:$0xff] }
  0x20   :  { %v127_v11 = vld [vmem:[#allocation5 + $0x20] sm:$0xff]  ;;  %v126_v12 = vld [vmem:[#allocation5 + $0x18] sm:$0xff]  ;;  %v125_v13 = vld [vmem:[#allocation5 + $0x10] sm:$0xff] }
  0x21   :  { %147 = vmatpush.msra.mxu0 %v136_v2  ;;  %v124_v14 = vld [vmem:[#allocation5 + $0x8] sm:$0xff]  ;;  %v123_v15 = vld [vmem:[#allocation5] sm:$0xff]  ;;  %v122_v16 = vld [vmem:[#allocation2] sm:$0xff] }
  0x22   :  { %v428_v17 = vld [vmem:[#allocation8] ss:$0 sm:$0xff]  ;;  %v212_v21 = vld [vmem:[#allocation7 + $0x78] sm:$0xff]  ;;  %v211_v22 = vld [vmem:[#allocation7 + $0x70] sm:$0xff] }
  0x23   :  { %148 = vmatpush.msra.mxu0 %v135_v3  ;;  %222 = vmatpush.msra.mxu1 %v212_v21  ;;  %v210_v23 = vld [vmem:[#allocation7 + $0x68] sm:$0xff]  ;;  %v209_v24 = vld [vmem:[#allocation7 + $0x60] sm:$0xff]  ;;  %v208_v25 = vld [vmem:[#allocation7 + $0x58] sm:$0xff] }
  0x24   :  { %v207_v26 = vld [vmem:[#allocation7 + $0x50] sm:$0xff]  ;;  %v206_v27 = vld [vmem:[#allocation7 + $0x48] sm:$0xff]  ;;  %v205_v28 = vld [vmem:[#allocation7 + $0x40] sm:$0xff] }
  0x25   :  { %149 = vmatpush.msra.mxu0 %v134_v4  ;;  %223 = vmatpush.msra.mxu1 %v211_v22  ;;  %v204_v29 = vld [vmem:[#allocation7 + $0x38] sm:$0xff]  ;;  %v203_v30 = vld [vmem:[#allocation7 + $0x30] sm:$0xff]  ;;  %v202_v31 = vld [vmem:[#allocation7 + $0x28] sm:$0xff] }
  0x26   :  { %v201_v32 = vld [vmem:[#allocation7 + $0x20] sm:$0xff]  ;;  %v200_v34 = vld [vmem:[#allocation7 + $0x18] sm:$0xff]  ;;  %v199_v35 = vld [vmem:[#allocation7 + $0x10] sm:$0xff] }
  0x27   :  { %150 = vmatpush.msra.mxu0 %v133_v5  ;;  %224 = vmatpush.msra.mxu1 %v210_v23  ;;  %v198_v37 = vld [vmem:[#allocation7 + $0x8] sm:$0xff]  ;;  %v197_v38 = vld [vmem:[#allocation7] sm:$0xff]  ;;  %v429_v52 = vld [vmem:[%s735_s4] ss:$0 sm:$0xff] }
  0x28   :  { %v430_v55 = vld [vmem:[#allocation10] ss:$0 sm:$0xff]  ;;  %v431_v59 = vld [vmem:[#allocation8 + $0x1] ss:$0 sm:$0xff]  ;;  %v291_v63 = vld [vmem:[#allocation7 + $0xf8] sm:$0xff] }
  0x29   :  { %151 = vmatpush.msra.mxu0 %v132_v6  ;;  %225 = vmatpush.msra.mxu1 %v209_v24  ;;  %v290_v0 = vld [vmem:[#allocation7 + $0xf0] sm:$0xff]  ;;  %v289_v1 = vld [vmem:[#allocation7 + $0xe8] sm:$0xff]  ;;  %v288_v2 = vld [vmem:[#allocation7 + $0xe0] sm:$0xff] }
  0x2a   :  { %301 = vmatpush.msra.mxu2 %v291_v63  ;;  %v287_v3 = vld [vmem:[#allocation7 + $0xd8] sm:$0xff]  ;;  %v286_v4 = vld [vmem:[#allocation7 + $0xd0] sm:$0xff]  ;;  %v285_v5 = vld [vmem:[#allocation7 + $0xc8] sm:$0xff] }
  0x2b   :  { %152 = vmatpush.msra.mxu0 %v131_v7  ;;  %226 = vmatpush.msra.mxu1 %v208_v25  ;;  %v284_v6 = vld [vmem:[#allocation7 + $0xc0] sm:$0xff]  ;;  %v283_v7 = vld [vmem:[#allocation7 + $0xb8] sm:$0xff] }
  0x2c   :  { %302 = vmatpush.msra.mxu2 %v290_v0 }
  0x2d   :  { %153 = vmatpush.msra.mxu0 %v130_v8  ;;  %227 = vmatpush.msra.mxu1 %v207_v26  ;;  %v282_v8 = vld [vmem:[#allocation7 + $0xb0] sm:$0xff] }
  0x2e   :  { %303 = vmatpush.msra.mxu2 %v289_v1 }
  0x2f   :  { %154 = vmatpush.msra.mxu0 %v129_v9  ;;  %228 = vmatpush.msra.mxu1 %v206_v27 }
  0x30   :  { %304 = vmatpush.msra.mxu2 %v288_v2 }
  0x31   :  { %155 = vmatpush.msra.mxu0 %v128_v10  ;;  %229 = vmatpush.msra.mxu1 %v205_v28  ;;  %v281_v10 = vld [vmem:[#allocation7 + $0xa8] sm:$0xff] }
  0x32   :  { %305 = vmatpush.msra.mxu2 %v287_v3 }
  0x33   :  { %156 = vmatpush.msra.mxu0 %v127_v11  ;;  %230 = vmatpush.msra.mxu1 %v204_v29  ;;  %v280_v11 = vld [vmem:[#allocation7 + $0xa0] sm:$0xff] }
  0x34   :  { %306 = vmatpush.msra.mxu2 %v286_v4 }
  0x35   :  { %157 = vmatpush.msra.mxu0 %v126_v12  ;;  %231 = vmatpush.msra.mxu1 %v203_v30  ;;  %v279_v12 = vld [vmem:[#allocation7 + $0x98] sm:$0xff] }
  0x36   :  { %307 = vmatpush.msra.mxu2 %v285_v5  ;;  %v432_v30 = vld [vmem:[%s735_s4 + $0x1] ss:$0 sm:$0xff] }
  0x37   :  { %158 = vmatpush.msra.mxu0 %v125_v13  ;;  %232 = vmatpush.msra.mxu1 %v202_v31 }
  0x38   :  { %308 = vmatpush.msra.mxu2 %v284_v6 }
  0x39   :  { %159 = vmatpush.msra.mxu0 %v124_v14  ;;  %233 = vmatpush.msra.mxu1 %v201_v32  ;;  %v278_v14 = vld [vmem:[#allocation7 + $0x90] sm:$0xff] }
  0x3a   :  { %309 = vmatpush.msra.mxu2 %v283_v7 }
  0x3b   :  { %160 = vmatpush.msra.mxu0 %v123_v15  ;;  %234 = vmatpush.msra.mxu1 %v200_v34  ;;  %v277_v15 = vld [vmem:[#allocation7 + $0x88] sm:$0xff] }
  0x3c   :  { %161 = vmatmul.f32.vlgmr.msra.gmra.mxu0 %v122_v16  ;;  %310 = vmatpush.msra.mxu2 %v282_v8 }
  0x3d   :  { %235 = vmatpush.msra.mxu1 %v199_v35 }
  0x3e   :  { %311 = vmatpush.msra.mxu2 %v281_v10 }
  0x3f   :  { %236 = vmatpush.msra.mxu1 %v198_v37 }
  0x40   :  { %312 = vmatpush.msra.mxu2 %v280_v11 }
  0x41   :  { %237 = vmatpush.msra.mxu1 %v197_v38  ;;  %v434_v38 = vld [vmem:[#allocation8 + $0x2] ss:$0 sm:$0xff] }
  0x42   :  { %313 = vmatpush.msra.mxu2 %v279_v12  ;;  %v436_v12 = vld [vmem:[#allocation10 + $0x2] ss:$0 sm:$0xff] }
  0x44   :  { %314 = vmatpush.msra.mxu2 %v278_v14 }
  0x46   :  { %315 = vmatpush.msra.mxu2 %v277_v15 }
  0xb9   :  { %v162_v18 = vpop.f32.mrf.mxu0 }
  0xba   :  { %v163_v19 = vadd.f32 %v428_v17, %v162_v18 }
  0xbc   :  { %165 = vadd.xlane.f32.xlu0 %v163_v19  ;;  %v168_v20 = vmul.f32 %v163_v19, %v163_v19 }
  0xc4   :  { %169 = vadd.xlane.f32.xlu0 %v168_v20 }
 0x12f   :  { %v166_v33 = vpop.xlane.xlu0 %165 }
 0x130   :  { %v167_v36 = vmul.f32 0.03125, %v166_v33  ;;  %v433_v33 = vld [vmem:[#allocation10 + $0x1] ss:$0 sm:$0xff] }
 0x132   :  { %v172_v40 = vmul.f32 %v167_v36, %v167_v36  ;;  %v175_v51 = vsub.f32 %v163_v19, %v167_v36  ;;  %v276_v19 = vld [vmem:[#allocation7 + $0x80] sm:$0xff] }
 0x133   :  { %316 = vmatpush.msra.mxu2 %v276_v19 }
 0x137   :  { %v170_v39 = vpop.xlane.xlu0 %169 }
 0x138   :  { %v171_v41 = vmul.f32 0.03125, %v170_v39 }
 0x13a   :  { %v173_v42 = vsub.f32 %v171_v41, %v172_v40 }
 0x13c   :  { %v174_v43 = vmax.f32 %v173_v42, 0.0  ;;  %v369_v42 = vld [vmem:[#allocation11 + $0x78] sm:$0xff] }
 0x13d   :  { %374 = vmatpush.msra.mxu3 %v369_v42 }
 0x13e   :  { %v176_v44 = vadd.f32 1e-05, %v174_v43  ;;  %v368_v43 = vld [vmem:[#allocation11 + $0x70] sm:$0xff] }
 0x13f   :  { %375 = vmatpush.msra.mxu3 %v368_v43 }
 0x140   :  { %438 = vrsqrt.f32 %v176_v44  ;;  %vm183_vm1 = vweird.f32 %v176_v44 }
 0x146   :  { %v439_v45 = vpop.eup %438 }
 0x147   :  { %v178_v46 = vmul.f32 %v439_v45, %v176_v44  ;;  %vm184_vm0 = vweird.f32 %v439_v45  ;;  %v367_v44 = vld [vmem:[#allocation11 + $0x68] sm:$0xff] }
 0x148   :  { %vm185_vm2 = vmor %vm183_vm1, %vm184_vm0  ;;  %376 = vmatpush.msra.mxu3 %v367_v44 }
 0x149   :  { %v179_v47 = vmul.f32 %v439_v45, %v178_v46  ;;  %v365_v46 = vld [vmem:[#allocation11 + $0x58] sm:$0xff] }
 0x14b   :  { %v180_v48 = vmul.f32 0.5, %v179_v47  ;;  %v364_v47 = vld [vmem:[#allocation11 + $0x50] sm:$0xff] }
 0x14d   :  { %v181_v49 = vsub.f32 1.5, %v180_v48  ;;  %v363_v48 = vld [vmem:[#allocation11 + $0x48] sm:$0xff] }
 0x14f   :  { %v182_v50 = vmul.f32 %v439_v45, %v181_v49  ;;  %v362_v49 = vld [vmem:[#allocation11 + $0x40] sm:$0xff] }
 0x151   :  { %v186_v53 = vsel %vm185_vm2, %v439_v45, %v182_v50  ;;  %v366_v45 = vld [vmem:[#allocation11 + $0x60] sm:$0xff]  ;;  %v361_v50 = vld [vmem:[#allocation11 + $0x38] sm:$0xff] }
 0x152   :  { %v187_v54 = vmul.f32 %v186_v53, %v175_v51  ;;  %377 = vmatpush.msra.mxu3 %v366_v45  ;;  %v360_v51 = vld [vmem:[#allocation11 + $0x30] sm:$0xff]  ;;  %v359_v53 = vld [vmem:[#allocation11 + $0x28] sm:$0xff] }
 0x154   :  { %v191_v56 = vmul.f32 %v429_v52, %v187_v54  ;;  %378 = vmatpush.msra.mxu3 %v365_v46  ;;  %v358_v54 = vld [vmem:[#allocation11 + $0x20] sm:$0xff] }
 0x156   :  { %v708_v57 = vadd.f32 %v430_v55, %v191_v56  ;;  %379 = vmatpush.msra.mxu3 %v364_v47  ;;  %v357_v55 = vld [vmem:[#allocation11 + $0x18] sm:$0xff] }
 0x158   :  { %v196_v58 = vmax.f32 %v708_v57, 0.0  ;;  %380 = vmatpush.msra.mxu3 %v363_v48  ;;  %v356_v57 = vld [vmem:[#allocation11 + $0x10] sm:$0xff] }
 0x15a   :  { %238 = vmatmul.f32.vlgmr.msra.gmra.mxu1 %v196_v58  ;;  %381 = vmatpush.msra.mxu3 %v362_v49 }
 0x15c   :  { %382 = vmatpush.msra.mxu3 %v361_v50 }
 0x15e   :  { %383 = vmatpush.msra.mxu3 %v360_v51 }
 0x160   :  { %384 = vmatpush.msra.mxu3 %v359_v53 }
 0x162   :  { %385 = vmatpush.msra.mxu3 %v358_v54 }
 0x164   :  { %386 = vmatpush.msra.mxu3 %v357_v55 }
 0x166   :  { %387 = vmatpush.msra.mxu3 %v356_v57 }
 0x1d7   :  { %v239_v60 = vpop.f32.mrf.mxu1 }
 0x1d8   :  { %v240_v61 = vadd.f32 %v431_v59, %v239_v60 }
 0x1da   :  { %242 = vadd.xlane.f32.xlu1 %v240_v61  ;;  %v245_v62 = vmul.f32 %v240_v61, %v240_v61 }
 0x1e2   :  { %246 = vadd.xlane.f32.xlu1 %v245_v62  ;;  %v354_v62 = vld [vmem:[#allocation11] sm:$0xff] }
 0x24d   :  { %v243_v9 = vpop.xlane.xlu1 %242 }
 0x24e   :  { %v244_v13 = vmul.f32 0.03125, %v243_v9  ;;  %v435_v9 = vld [vmem:[%s735_s4 + $0x2] ss:$0 sm:$0xff] }
 0x250   :  { %v249_v17 = vmul.f32 %v244_v13, %v244_v13  ;;  %v252_v29 = vsub.f32 %v240_v61, %v244_v13 }
 0x255   :  { %v247_v16 = vpop.xlane.xlu1 %246 }
 0x256   :  { %v248_v18 = vmul.f32 0.03125, %v247_v16 }
 0x258   :  { %v250_v20 = vsub.f32 %v248_v18, %v249_v17  ;;  %v437_v17 = vld [vmem:[%s738_s7] ss:$0 sm:$0xff] }
 0x25a   :  { %v251_v21 = vmax.f32 %v250_v20, 0.0 }
 0x25c   :  { %v253_v22 = vadd.f32 1e-05, %v251_v21 }
 0x25e   :  { %440 = vrsqrt.f32 %v253_v22  ;;  %vm260_vm4 = vweird.f32 %v253_v22 }
 0x264   :  { %v441_v23 = vpop.eup %440 }
 0x265   :  { %v255_v24 = vmul.f32 %v441_v23, %v253_v22  ;;  %vm261_vm3 = vweird.f32 %v441_v23 }
 0x266   :  { %vm262_vm5 = vmor %vm260_vm4, %vm261_vm3 }
 0x267   :  { %v256_v25 = vmul.f32 %v441_v23, %v255_v24 }
 0x269   :  { %v257_v26 = vmul.f32 0.5, %v256_v25 }
 0x26b   :  { %v258_v27 = vsub.f32 1.5, %v257_v26 }
 0x26d   :  { %v259_v28 = vmul.f32 %v441_v23, %v258_v27 }
 0x26f   :  { %v263_v31 = vsel %vm262_vm5, %v441_v23, %v259_v28 }
 0x270   :  { %v264_v32 = vmul.f32 %v263_v31, %v252_v29 }
 0x272   :  { %v268_v34 = vmul.f32 %v432_v30, %v264_v32 }
 0x274   :  { %v272_v35 = vadd.f32 %v433_v33, %v268_v34 }
 0x276   :  { %v273_v36 = vmax.f32 %v272_v35, 0.0 }
 0x278   :  { %v718_v37 = vadd.f32 %v273_v36, %v196_v58  ;;  %v355_v58 = vld [vmem:[#allocation11 + $0x8] sm:$0xff] }
 0x279   :  { %388 = vmatpush.msra.mxu3 %v355_v58 }
 0x27a   :  { %317 = vmatmul.f32.vlgmr.msra.gmra.mxu2 %v718_v37 }
 0x27b   :  { %389 = vmatpush.msra.mxu3 %v354_v62 }
 0x2fd   :  { %v318_v39 = vpop.f32.mrf.mxu2 }
 0x2fe   :  { %v319_v40 = vadd.f32 %v434_v38, %v318_v39 }
 0x300   :  { %321 = vadd.xlane.f32.xlu2 %v319_v40  ;;  %v324_v41 = vmul.f32 %v319_v40, %v319_v40 }
 0x308   :  { %325 = vadd.xlane.f32.xlu2 %v324_v41 }
 0x373   :  { %v322_v52 = vpop.xlane.xlu2 %321 }
 0x374   :  { %v323_v56 = vmul.f32 0.03125, %v322_v52 }
 0x376   :  { %v328_v60 = vmul.f32 %v323_v56, %v323_v56  ;;  %v331_v8 = vsub.f32 %v319_v40, %v323_v56 }
 0x37b   :  { %v326_v59 = vpop.xlane.xlu2 %325 }
 0x37c   :  { %v327_v61 = vmul.f32 0.03125, %v326_v59 }
 0x37e   :  { %v329_v63 = vsub.f32 %v327_v61, %v328_v60 }
 0x380   :  { %v330_v0 = vmax.f32 %v329_v63, 0.0 }
 0x382   :  { %v332_v1 = vadd.f32 1e-05, %v330_v0 }
 0x384   :  { %442 = vrsqrt.f32 %v332_v1  ;;  %vm339_vm7 = vweird.f32 %v332_v1 }
 0x38a   :  { %v443_v2 = vpop.eup %442 }
 0x38b   :  { %v334_v3 = vmul.f32 %v443_v2, %v332_v1  ;;  %vm340_vm6 = vweird.f32 %v443_v2 }
 0x38c   :  { %vm341_vm8 = vmor %vm339_vm7, %vm340_vm6 }
 0x38d   :  { %v335_v4 = vmul.f32 %v443_v2, %v334_v3 }
 0x38f   :  { %v336_v5 = vmul.f32 0.5, %v335_v4 }
 0x391   :  { %v337_v6 = vsub.f32 1.5, %v336_v5 }
 0x393   :  { %v338_v7 = vmul.f32 %v443_v2, %v337_v6 }
 0x395   :  { %v342_v10 = vsel %vm341_vm8, %v443_v2, %v338_v7 }
 0x396   :  { %v343_v11 = vmul.f32 %v342_v10, %v331_v8 }
 0x398   :  { %v347_v13 = vmul.f32 %v435_v9, %v343_v11 }
 0x39a   :  { %v351_v14 = vadd.f32 %v436_v12, %v347_v13 }
 0x39c   :  { %v352_v15 = vmax.f32 %v351_v14, 0.0 }
 0x39e   :  { %v353_v16 = vadd.f32 %v352_v15, %v718_v37 }
 0x3a0   :  { %390 = vmatmul.f32.vlgmr.msra.gmra.mxu3 %v353_v16 }
 0x423   :  { %v391_v18 = vpop.f32.mrf.mxu3 }
 0x424   :  { %v392_v19 = vadd.f32 %v437_v17, %v391_v18 }
 0x426   :  { %394 = vst [vmem:[#allocation13] sm:$0xff] %v392_v19 }
 0x427   :  { %405 = dma.vmem_to_hbm [thread:$0]  %s401_s19, 128, %s403_s3, [#allocation4]  }
 0x428   :  { %620 = dma.done.wait [#allocation4], 128  }
 0x429   :  { %621 = vsyncadd [#allocation4], 4294967168 }
 0x42a   :  { %410 = vsyncpa [#allocation3], 1 }
 0x42b   :  { %411 = vsyncpa [#allocation6], 1 }
 0x42c   :  { %412 = vsyncpa [#allocation9], 1 }
 0x42d   :  { %413 = vsyncpa [#allocation12], 1 }
 0x42e   :  { %414 = vsyncpa [#allocation4], 1 }

</bundles_post_ra>
